<compile_context>
chip_gen: v7x
topology: tpu7x:2x2x1
jax: 0.10.0
libtpu: 0.0.40
codegen_flags: <defaults>
</compile_context>

<pallas_src>
import functools

import jax
import jax.numpy as jnp
from jax.experimental import pallas as pl
from jax.experimental.pallas import tpu as pltpu

EPS = 1e-5
IN_PAD = 64      # 50 -> 64  (aligned contraction dim for the first matmul)
HID = 512
OUT_PAD = 128    # 10 -> 128 (lane-dense output stores)


def _fwd_stats_kernel(x_ref, w1_ref, b1_ref, w2_ref, b2_ref,
                      h2_ref, sum_ref, sumsq_ref, *, tb, b_real):
    # Linear(50->512) + ReLU  (bf16 operands, f32 MXU accumulation)
    h1 = jnp.dot(x_ref[...], w1_ref[...],
                 preferred_element_type=jnp.float32) + b1_ref[...]
    h1 = jnp.maximum(h1, 0.0)

    # Linear(512->512)
    h2 = jnp.dot(h1.astype(jnp.bfloat16), w2_ref[...],
                 preferred_element_type=jnp.float32) + b2_ref[...]
    h2_ref[...] = h2

    # Per-tile partial batch statistics; mask rows beyond the real batch so
    # zero-padded rows never pollute the BatchNorm statistics.
    row = jax.lax.broadcasted_iota(jnp.int32, (tb, 1), 0) + pl.program_id(0) * tb
    valid = (row < b_real).astype(jnp.float32)
    h2m = h2 * valid
    sum_ref[...] = jnp.sum(h2m, axis=0, keepdims=True)[None]
    sumsq_ref[...] = jnp.sum(h2m * h2m, axis=0, keepdims=True)[None]


def _bn_out_kernel(h2_ref, scale_ref, shift_ref, w3_ref, b3_ref, o_ref):
    # BatchNorm apply (pre-folded scale/shift) + ReLU + Linear(512->10, padded to 128)
    h3 = jnp.maximum(h2_ref[...] * scale_ref[...] + shift_ref[...], 0.0)
    out = jnp.dot(h3.astype(jnp.bfloat16), w3_ref[...],
                  preferred_element_type=jnp.float32) + b3_ref[...]
    o_ref[...] = out


def cifar10_mlp(x, params, *, tb=128):
    """x: [B, 50] float32 -> logits [B, 10] float32.

    tb: batch tile. 128 is safe on every generation; use 256 to fully fill the
    2x256 MXU rows on v6e/v7x (still well inside the 32 MiB scoped VMEM budget).
    """
    w1p, b1, w2p, b2, gamma, beta, w3p, b3p = params
    B = x.shape[0]
    num_tiles = pl.cdiv(B, tb)
    Bp = num_tiles * tb

    # Pad batch to a tile multiple and K to 64; cast input to bf16 for the MXU.
    xp = jnp.zeros((Bp, IN_PAD), jnp.bfloat16)
    xp = xp.at[:B, :50].set(x.astype(jnp.bfloat16))

    parallel = pltpu.CompilerParams(dimension_semantics=("parallel",))

    # Pass 1: Linear1 + ReLU + Linear2 and per-tile sum / sum-of-squares of h2.
    h2, psum, psumsq = pl.pallas_call(
        functools.partial(_fwd_stats_kernel, tb=tb, b_real=B),
        out_shape=(jax.ShapeDtypeStruct((Bp, HID), jnp.float32),
                   jax.ShapeDtypeStruct((num_tiles, 1, HID), jnp.float32),
                   jax.ShapeDtypeStruct((num_tiles, 1, HID), jnp.float32)),
        grid=(num_tiles,),
        in_specs=[pl.BlockSpec((tb, IN_PAD), lambda i: (i, 0)),
                  pl.BlockSpec((IN_PAD, HID), lambda i: (0, 0)),   # resident
                  pl.BlockSpec((1, HID), lambda i: (0, 0)),        # resident
                  pl.BlockSpec((HID, HID), lambda i: (0, 0)),      # resident
                  pl.BlockSpec((1, HID), lambda i: (0, 0))],       # resident
        out_specs=(pl.BlockSpec((tb, HID), lambda i: (i, 0)),
                   pl.BlockSpec((1, 1, HID), lambda i: (i, 0, 0)),
                   pl.BlockSpec((1, 1, HID), lambda i: (i, 0, 0))),
        compiler_params=parallel,
    )(xp, w1p, b1, w2p, b2)

    # Finalize BatchNorm1d batch statistics (training mode, biased variance)
    # and fold gamma/beta into a single scale/shift (tiny [512] work in XLA).
    total = jnp.sum(psum, axis=0)          # (1, HID)
    total_sq = jnp.sum(psumsq, axis=0)     # (1, HID)
    mean = total / B
    var = jnp.maximum(total_sq / B - mean * mean, 0.0)
    scale = gamma * jax.lax.rsqrt(var + EPS)
    shift = beta - mean * scale

    # Pass 2: BN apply + ReLU + Linear3 with a lane-dense [tb, 128] output.
    outp = pl.pallas_call(
        _bn_out_kernel,
        out_shape=jax.ShapeDtypeStruct((Bp, OUT_PAD), jnp.float32),
        grid=(num_tiles,),
        in_specs=[pl.BlockSpec((tb, HID), lambda i: (i, 0)),
                  pl.BlockSpec((1, HID), lambda i: (0, 0)),        # resident
                  pl.BlockSpec((1, HID), lambda i: (0, 0)),        # resident
                  pl.BlockSpec((HID, OUT_PAD), lambda i: (0, 0)),  # resident
                  pl.BlockSpec((1, OUT_PAD), lambda i: (0, 0))],   # resident
        out_specs=pl.BlockSpec((tb, OUT_PAD), lambda i: (i, 0)),
        compiler_params=parallel,
    )(h2, scale, shift, w3p, b3p)

    return outp[:B, :10]


def init_params(key):
    """PyTorch-style Linear init (uniform(-1/sqrt(fan_in), 1/sqrt(fan_in)));
    BatchNorm gamma=1, beta=0.  Weights are stored [in, out], padded to the
    kernel layout (K 50->64, final N 10->128) and cast to bf16."""
    def linear(key, fan_in, fan_out):
        kw, kb = jax.random.split(key)
        bound = 1.0 / jnp.sqrt(float(fan_in))
        w = jax.random.uniform(kw, (fan_in, fan_out), jnp.float32, -bound, bound)
        b = jax.random.uniform(kb, (1, fan_out), jnp.float32, -bound, bound)
        return w, b

    k1, k2, k3 = jax.random.split(key, 3)
    w1, b1 = linear(k1, 50, 512)
    w2, b2 = linear(k2, 512, 512)
    w3, b3 = linear(k3, 512, 10)
    gamma = jnp.ones((1, HID), jnp.float32)
    beta = jnp.zeros((1, HID), jnp.float32)

    w1p = jnp.zeros((IN_PAD, HID), jnp.float32).at[:50].set(w1).astype(jnp.bfloat16)
    w2p = w2.astype(jnp.bfloat16)
    w3p = jnp.zeros((HID, OUT_PAD), jnp.float32).at[:, :10].set(w3).astype(jnp.bfloat16)
    b3p = jnp.zeros((1, OUT_PAD), jnp.float32).at[:, :10].set(b3)
    return (w1p, b1, w2p, b2, gamma, beta, w3p, b3p)


if __name__ == "__main__":
    key = jax.random.PRNGKey(0)
    kx, kp = jax.random.split(key)

    B = 200  # not a multiple of the tile -> exercises batch padding + masking
    x = jax.random.normal(kx, (B, 50), jnp.float32)
    params = init_params(kp)

    out = cifar10_mlp(x, params, tb=128)
    out = jax.block_until_ready(out)
    assert out.shape == (B, 10) and out.dtype == jnp.float32

    # Plain-JAX reference mirroring the kernel's bf16-operand / f32-accum casts.
    w1p, b1, w2p, b2, gamma, beta, w3p, b3p = params
    xf = x.astype(jnp.bfloat16).astype(jnp.float32)
    w1f = w1p[:50].astype(jnp.float32)
    h1 = jnp.maximum(xf @ w1f + b1, 0.0)
    h1b = h1.astype(jnp.bfloat16).astype(jnp.float32)
    h2 = h1b @ w2p.astype(jnp.float32) + b2
    m = jnp.mean(h2, axis=0, keepdims=True)
    v = jnp.mean((h2 - m) ** 2, axis=0, keepdims=True)      # biased variance
    h3 = jnp.maximum((h2 - m) * jax.lax.rsqrt(v + EPS) * gamma + beta, 0.0)
    h3b = h3.astype(jnp.bfloat16).astype(jnp.float32)
    ref = h3b @ w3p[:, :10].astype(jnp.float32) + b3p[:, :10]
    assert jnp.allclose(out, ref, atol=5e-3, rtol=5e-3), \
        float(jnp.max(jnp.abs(out - ref)))

    print("KERNEL_OK")
</pallas_src>

<mosaic_0001>
module attributes {stable_mosaic.version = 11 : i64} {
  func.func @_fwd_stats_kernel(%arg0: i32, %arg1: memref<128x64xbf16, #tpu.memory_space<vmem>>, %arg2: memref<64x512xbf16, #tpu.memory_space<vmem>>, %arg3: memref<1x512xf32, #tpu.memory_space<vmem>>, %arg4: memref<512x512xbf16, #tpu.memory_space<vmem>>, %arg5: memref<1x512xf32, #tpu.memory_space<vmem>>, %arg6: memref<128x512xf32, #tpu.memory_space<vmem>>, %arg7: memref<1x1x512xf32, #tpu.memory_space<vmem>>, %arg8: memref<1x1x512xf32, #tpu.memory_space<vmem>>) attributes {dimension_semantics = [#tpu.dimension_semantics<parallel>], iteration_bounds = array<i64: 2>, scalar_prefetch = 0 : i64, scratch_operands = 0 : i64, tpu.core_type = #tpu.core_type<tc>, window_params = [{transform_indices = @transform_0, window_bounds = array<i64: 128, 64>}, {pipeline_mode = #tpu.pipeline_mode<synchronous>, transform_indices = @transform_1, window_bounds = array<i64: 64, 512>}, {pipeline_mode = #tpu.pipeline_mode<synchronous>, transform_indices = @transform_2, window_bounds = array<i64: 1, 512>}, {pipeline_mode = #tpu.pipeline_mode<synchronous>, transform_indices = @transform_3, window_bounds = array<i64: 512, 512>}, {pipeline_mode = #tpu.pipeline_mode<synchronous>, transform_indices = @transform_4, window_bounds = array<i64: 1, 512>}, {transform_indices = @transform_5, window_bounds = array<i64: 128, 512>}, {transform_indices = @transform_6, window_bounds = array<i64: 1, 1, 512>}, {transform_indices = @transform_7, window_bounds = array<i64: 1, 1, 512>}]} {
    %c0 = arith.constant 0 : index
    %c0_0 = arith.constant 0 : index
    %0 = vector.load %arg1[%c0, %c0_0] : memref<128x64xbf16, #tpu.memory_space<vmem>>, vector<128x64xbf16>
    %c0_1 = arith.constant 0 : index
    %c0_2 = arith.constant 0 : index
    %1 = vector.load %arg2[%c0_1, %c0_2] : memref<64x512xbf16, #tpu.memory_space<vmem>>, vector<64x512xbf16>
    %cst = arith.constant dense<0.000000e+00> : vector<128x512xf32>
    %2 = tpu.matmul %0, %1, %cst {dimension_numbers = #tpu.dot_dimension_numbers<[1], [0], [0], [1], [0, 0, 1, 1], [], []>} : vector<128x64xbf16>, vector<64x512xbf16>, vector<128x512xf32> -> vector<128x512xf32>
    %c0_3 = arith.constant 0 : index
    %c0_4 = arith.constant 0 : index
    %3 = vector.load %arg3[%c0_3, %c0_4] : memref<1x512xf32, #tpu.memory_space<vmem>>, vector<1x512xf32>
    %4 = vector.broadcast %3 : vector<1x512xf32> to vector<128x512xf32>
    %5 = arith.addf %2, %4 : vector<128x512xf32>
    %cst_5 = arith.constant 0.000000e+00 : f32
    %6 = vector.broadcast %cst_5 : f32 to vector<128x512xf32>
    %7 = arith.maximumf %5, %6 : vector<128x512xf32>
    %8 = arith.truncf %7 : vector<128x512xf32> to vector<128x512xbf16>
    %c0_6 = arith.constant 0 : index
    %c0_7 = arith.constant 0 : index
    %9 = vector.load %arg4[%c0_6, %c0_7] : memref<512x512xbf16, #tpu.memory_space<vmem>>, vector<512x512xbf16>
    %cst_8 = arith.constant dense<0.000000e+00> : vector<128x512xf32>
    %10 = tpu.matmul %8, %9, %cst_8 {dimension_numbers = #tpu.dot_dimension_numbers<[1], [0], [0], [1], [0, 0, 1, 1], [], []>} : vector<128x512xbf16>, vector<512x512xbf16>, vector<128x512xf32> -> vector<128x512xf32>
    %c0_9 = arith.constant 0 : index
    %c0_10 = arith.constant 0 : index
    %11 = vector.load %arg5[%c0_9, %c0_10] : memref<1x512xf32, #tpu.memory_space<vmem>>, vector<1x512xf32>
    %12 = vector.broadcast %11 : vector<1x512xf32> to vector<128x512xf32>
    %13 = arith.addf %10, %12 : vector<128x512xf32>
    %c0_11 = arith.constant 0 : index
    %c0_12 = arith.constant 0 : index
    %14 = vector.load %arg6[%c0_11, %c0_12] : memref<128x512xf32, #tpu.memory_space<vmem>>, vector<128x512xf32>
    tpu.vector_store %arg6[%c0_11, %c0_12], %13 {strides = array<i32>} : memref<128x512xf32, #tpu.memory_space<vmem>>, vector<128x512xf32>,
    %15 = tpu.iota {dimensions = array<i32: 0>} : vector<128x1xi32>
    %c128_i32 = arith.constant 128 : i32
    %16 = arith.muli %arg0, %c128_i32 : i32
    %17 = vector.broadcast %16 : i32 to vector<128x1xi32>
    %18 = arith.addi %15, %17 : vector<128x1xi32>
    %c200_i32 = arith.constant 200 : i32
    %19 = vector.broadcast %c200_i32 : i32 to vector<128x1xi32>
    %20 = arith.cmpi slt, %18, %19 : vector<128x1xi32>
    %21 = arith.extui %20 : vector<128x1xi1> to vector<128x1xi32>
    %22 = arith.sitofp %21 : vector<128x1xi32> to vector<128x1xf32>
    %23 = vector.broadcast %22 : vector<128x1xf32> to vector<128x512xf32>
    %24 = arith.mulf %13, %23 : vector<128x512xf32>
    %cst_13 = arith.constant dense<0.000000e+00> : vector<512xf32>
    %25 = vector.multi_reduction <add>, %24, %cst_13 [0] : vector<128x512xf32> to vector<512xf32>
    %26 = vector.shape_cast %25 : vector<512xf32> to vector<1x512xf32>
    %27 = vector.shape_cast %26 : vector<1x512xf32> to vector<1x1x512xf32>
    %c0_14 = arith.constant 0 : index
    %c0_15 = arith.constant 0 : index
    %c0_16 = arith.constant 0 : index
    %28 = vector.load %arg7[%c0_14, %c0_15, %c0_16] : memref<1x1x512xf32, #tpu.memory_space<vmem>>, vector<1x1x512xf32>
    tpu.vector_store %arg7[%c0_14, %c0_15, %c0_16], %27 {strides = array<i32>} : memref<1x1x512xf32, #tpu.memory_space<vmem>>, vector<1x1x512xf32>,
    %29 = arith.mulf %24, %24 : vector<128x512xf32>
    %cst_17 = arith.constant dense<0.000000e+00> : vector<512xf32>
    %30 = vector.multi_reduction <add>, %29, %cst_17 [0] : vector<128x512xf32> to vector<512xf32>
    %31 = vector.shape_cast %30 : vector<512xf32> to vector<1x512xf32>
    %32 = vector.shape_cast %31 : vector<1x512xf32> to vector<1x1x512xf32>
    %c0_18 = arith.constant 0 : index
    %c0_19 = arith.constant 0 : index
    %c0_20 = arith.constant 0 : index
    %33 = vector.load %arg8[%c0_18, %c0_19, %c0_20] : memref<1x1x512xf32, #tpu.memory_space<vmem>>, vector<1x1x512xf32>
    tpu.vector_store %arg8[%c0_18, %c0_19, %c0_20], %32 {strides = array<i32>} : memref<1x1x512xf32, #tpu.memory_space<vmem>>, vector<1x1x512xf32>,
    return
  }
  func.func @transform_0(%arg0: i32) -> (i32, i32) {
    %c0_i32 = arith.constant 0 : i32
    %c0_i32_0 = arith.constant 0 : i32
    return %arg0, %c0_i32 : i32, i32
  }
  func.func @transform_1(%arg0: i32) -> (i32, i32) {
    %c0_i32 = arith.constant 0 : i32
    %c0_i32_0 = arith.constant 0 : i32
    %c0_i32_1 = arith.constant 0 : i32
    return %c0_i32, %c0_i32_0 : i32, i32
  }
  func.func @transform_2(%arg0: i32) -> (i32, i32) {
    %c0_i32 = arith.constant 0 : i32
    %c0_i32_0 = arith.constant 0 : i32
    %c0_i32_1 = arith.constant 0 : i32
    return %c0_i32, %c0_i32_0 : i32, i32
  }
  func.func @transform_3(%arg0: i32) -> (i32, i32) {
    %c0_i32 = arith.constant 0 : i32
    %c0_i32_0 = arith.constant 0 : i32
    %c0_i32_1 = arith.constant 0 : i32
    return %c0_i32, %c0_i32_0 : i32, i32
  }
  func.func @transform_4(%arg0: i32) -> (i32, i32) {
    %c0_i32 = arith.constant 0 : i32
    %c0_i32_0 = arith.constant 0 : i32
    %c0_i32_1 = arith.constant 0 : i32
    return %c0_i32, %c0_i32_0 : i32, i32
  }
  func.func @transform_5(%arg0: i32) -> (i32, i32) {
    %c0_i32 = arith.constant 0 : i32
    %c0_i32_0 = arith.constant 0 : i32
    return %arg0, %c0_i32 : i32, i32
  }
  func.func @transform_6(%arg0: i32) -> (i32, i32, i32) {
    %c0_i32 = arith.constant 0 : i32
    %c0_i32_0 = arith.constant 0 : i32
    %c0_i32_1 = arith.constant 0 : i32
    return %arg0, %c0_i32, %c0_i32_0 : i32, i32, i32
  }
  func.func @transform_7(%arg0: i32) -> (i32, i32, i32) {
    %c0_i32 = arith.constant 0 : i32
    %c0_i32_0 = arith.constant 0 : i32
    %c0_i32_1 = arith.constant 0 : i32
    return %arg0, %c0_i32, %c0_i32_0 : i32, i32, i32
  }
}

</mosaic_0001>

<bundles_post_ra>
// kernel: tpu_custom_call.1
= control target key start
LH: loop header
LB: loop body
LE: loop exit
PB: predicated region body
PF: predicated region fallthrough
CT: control target
= control target key end

     0   :  { %13 = vsyncpa [#allocation3], 0  ;;  %s4403_s0 = inlined_call_operand.vmem [shape: bf16[256,64], index: 0, kind: input, shape index: {}]   ;;  %s4404_s1 = inlined_call_operand.vmem [shape: bf16[64,512], index: 1, kind: input, shape index: {}]   ;;  %s4405_s2 = inlined_call_operand.vmem [shape: f32[1,512], index: 2, kind: input, shape index: {}]   ;;  %s4406_s3 = inlined_call_operand.hbm [shape: bf16[512,512], index: 3, kind: input, shape index: {}]   ;;  %s4407_s4 = inlined_call_operand.vmem [shape: f32[1,512], index: 4, kind: input, shape index: {}]   ;;  %s4408_s5 = inlined_call_operand.hbm [shape: f32[256,512], index: 5, kind: output, shape index: {0}]   ;;  %s4409_s6 = inlined_call_operand.hbm [shape: f32[2,1,512], index: 6, kind: output, shape index: {1}]   ;;  %s4410_s7 = inlined_call_operand.hbm [shape: f32[2,1,512], index: 7, kind: output, shape index: {2}]  }
   0x1   :  { %14 = vsyncpa [#allocation4], 0 }
   0x2   :  { %16 = vsyncpa [#allocation4 + $0x1], 0 }
   0x3   :  { %17 = vsyncpa [#allocation7], 0 }
   0x4   :  { %19 = vsyncpa [#allocation7 + $0x1], 0  ;;  %s3610_s24 = smov 0   ;;  %s3612_s25 = smov 0  }
   0x5   :  { %s3614_s26 = smov 0   ;;  %s3616_s27 = smov 0  }
   0x6 LB: > { %s3631_s28 = sadd.s32 4294967295, %s3557_s27   ;;  %s2772_s29 = sadd.s32 4294967294, %s3557_s27   ;;  %s3557_s27 = sphi %s3616_s27, %s4428_s27   ;;  %s3553_s26 = sphi %s3614_s26, %s4427_s26   ;;  %s3549_s25 = sphi %s3612_s25, %s4426_s25   ;;  %s3545_s24 = sphi %s3610_s24, %s4425_s24  }
   0x7   : > { %s3635_s30 = sadd.s32 1, %s3557_s27   ;;  %s142_s8 = sadd.s32 1, %s3553_s26 }
   0x8   : > { %s139_s9 = ssub.s32 %s3557_s27, %s3635_s30  ;;  %p152_p0 = scmp.ne.s32.totalorder %s3553_s26, %s3549_s25 }
   0x9   : > { %p140_p1 = scmp.eq.s32.totalorder %s139_s9, 0  ;;  %p153_p2 = scmp.eq.s32.totalorder %s3631_s28, 1 }
   0xa   : > { %p158_p3 = scmp.ne.s32.totalorder %s3549_s25, %s3545_s24  ;;  %p159_p4 = scmp.eq.s32.totalorder %s2772_s29, 1 }
   0xb   : > { %s3648_s10 = scalar_select %p140_p1, %s3553_s26, %s142_s8  }
   0xc   : > { %p3650_p5 = por %p153_p2, %p152_p0  ;;  %p3654_p6 = por %p159_p4, %p158_p3 }
   0xd   : > { %p2773_p7 = scmp.ge.s32.totalorder %s3557_s27, 1  ;;  %p218_p8 = scmp.lt.s32.totalorder %s3557_s27, 3 }
   0xe   : > { %s4414_s11 = scalar_select %p3650_p5, 1, 0 }
   0xf   : > { %s4415_s12 = scalar_select %p3654_p6, 1, 0 }
  0x10   : > { %p4411_p9 = scmp.eq.s32.totalorder %s3631_s28, 0  ;;  %p3661_p10 = pnand %p2773_p7, %p218_p8 }
  0x11   : > { %s3559_s14 = smov [#allocation2]   ;;  %s3403_s19 = scalar_lea.hbm %s4406_s3, 16384 }
  0x12   : > { %s4416_s13 = scalar_select %p3661_p10, 1, 0 }
  0x13   : > { %s236_s15 = sshll.u32 %s3559_s14, 4  ;;  %p3122_p11 = pneg %p3661_p10  ;;  %s237_s15 = int_to_ptr.vmem [resolvable:$true] %s236_s15 }
  0x14   : > { %p3404_p13 = scmp.ne.s32.totalorder %s4406_s3, %s3403_s19  ;;  %p3410_p3 = scmp.lt.u32.totalorder %s3403_s19, %s4406_s3 }
  0x15   : > { %p3669_p12 = pnand %p4411_p9, %p3122_p11 }
  0x17   : > { %p3405_p0 = pneg %p3669_p12 }
  0x19   : > { %p3406_p1 = pnand %p3405_p0, %p3404_p13 }
  0x1b   : > { %p3407_p2 = pneg %p3406_p1 }
  0x1d   : > { %p3412_p4 = pnand %p3410_p3, %p3407_p2 }
  0x1f   : > { %3415 = shalt.err (!%p3412_p4)
}
  0x20   : > { %s3416_s8 = scalar_lea.vmem %s237_s15, 16384  ;;  %p3424_p9 = scmp.lt.s32.totalorder %s237_s15, %s237_s15 }
  0x21   : > { %p3417_p7 = scmp.ne.s32.totalorder %s237_s15, %s3416_s8  ;;  %p3425_p6 = scmp.lt.s32.totalorder %s3416_s8, %s3416_s8 }
  0x23   : > { %p3419_p8 = pnand %p3417_p7, %p3405_p0  ;;  %p3426_p5 = por %p3425_p6, %p3424_p9 }
  0x25   : > { %p3420_p11 = pneg %p3419_p8 }
  0x27   : > { %p3427_p10 = pnand %p3426_p5, %p3420_p11 }
  0x29   : > { %3430 = shalt.err (!%p3427_p10)
}
  0x2a   : > { %s3560_s9 = smov 256   ;;  %s3561_s14 = smov 16  }
  0x2b   : > { %3125 = dma.hbm_to_vmem [thread:$0]  (!%p3669_p12), %s4406_s3, 16384, %s237_s15, [#allocation3], %s3560_s9, %s3560_s9, %s3561_s14  }
  0x2c   : > { %p4418_p13 = scmp.ne.s32.totalorder %s4416_s13, 0 }
  0x2d   : > { %p4419_p1 = scmp.eq.s32.totalorder (!%p4418_p13), %s3631_s28, 0 }
  0x2e   : > { %264 = sbr.rel (%p4418_p13) target bundleno = 728 (0x2d8), region = 40 }
  0x35   : > { %3532 = dma.done.wait (%p4419_p1), [#allocation3], 16384   ;;  %p4420_p0 = pmov %p4419_p1 }
  0x36   : > { %s2781_s19 = sshll.u32 %s3631_s28, 4  ;;  %v3562_v0 = vmov 0   ;;  %v3179_v1 = vld [vmem:[%s4404_s1 + $0x4] ss:$16 sps:$4 sm:$0xff]   ;;  %v3181_v2 = vld [vmem:[%s4404_s1] ss:$16 sps:$4 sm:$0xff]  }
  0x37   : > { %3534 = vsyncadd (%p4420_p0), [#allocation3], 4294950912  ;;  %545 = vmatprep.mubr.bf16.mxu0 %v3562_v0  ;;  %p307_p5 = scmp.lt.s32.totalorder %s2781_s19, 31  ;;  %658 = vmatprep.mubr.bf16.mxu1 %v3562_v0  ;;  %v3182_v3 = vld [vmem:[%s4404_s1 + $0x24] ss:$16 sps:$4 sm:$0xff]   ;;  %vm488_vm0 = vcmask 523264  }
  0x38   : > { %513 = vmatprep.subr.bf16.mxu0 %v3179_v1  ;;  %v3184_v4 = vld [vmem:[%s4404_s1 + $0x20] ss:$16 sps:$4 sm:$0xff]   ;;  %v3185_v5 = vld [vmem:[%s4404_s1 + $0x44] ss:$16 sps:$4 sm:$0xff]   ;;  %v3197_v9 = vld [vmem:[%s4404_s1 + $0xc] ss:$16 sps:$4 sm:$0xff]  }
  0x39   : > { %s4430_s19 = smov (!%p307_p5, %s2781_s19), 31  ;;  %514 = vmatpush1.bf16.msra.mxu0 %v3181_v2  ;;  %v3187_v6 = vld [vmem:[%s4404_s1 + $0x40] ss:$16 sps:$4 sm:$0xff]   ;;  %v3188_v7 = vld [vmem:[%s4404_s1 + $0x64] ss:$16 sps:$4 sm:$0xff]   ;;  %626 = vmatprep.subr.bf16.mxu1 %v3197_v9  ;;  %s2951_s16 = sshll.u32 %s3631_s28, 7 }
  0x3a   : > { %s2782_s21 = sshll.u32 %s4430_s19, 2  ;;  %515 = vmatprep.subr.bf16.mxu0 %v3182_v3  ;;  %v3190_v8 = vld [vmem:[%s4404_s1 + $0x60] ss:$16 sps:$4 sm:$0xff]   ;;  %v3199_v10 = vld [vmem:[%s4404_s1 + $0x8] ss:$16 sps:$4 sm:$0xff]   ;;  %s3967_s20 = sand.u32 1, %s3549_s25  }
  0x3b   : > { %s3716_s15 = scalar_lea.vmem %s4403_s0, %s2782_s21  ;;  %v3201_v12 = vld [vmem:[%s4404_s1 + $0x2c] ss:$16 sps:$4 sm:$0xff]   ;;  %627 = vmatpush1.bf16.msra.mxu1 %v3199_v10  ;;  %v3203_v13 = vld [vmem:[%s4404_s1 + $0x28] ss:$16 sps:$4 sm:$0xff]   ;;  %v3211_v16 = vld [vmem:[#allocation2] ss:$16 sps:$4 sm:$0xff]  }
  0x3c   : > { %v3191_v11 = vld [vmem:[%s3716_s15] sm:$0xff]   ;;  %628 = vmatprep.subr.bf16.mxu1 %v3201_v12  ;;  %v3204_v14 = vld [vmem:[%s4404_s1 + $0x4c] ss:$16 sps:$4 sm:$0xff]   ;;  %v3206_v15 = vld [vmem:[%s4404_s1 + $0x48] ss:$16 sps:$4 sm:$0xff]   ;;  %s2778_s22 = sshll.u32 %s3967_s20, 9 }
  0x3d   : > { %516 = vmatpush1.bf16.msra.mxu0 %v3184_v4  ;;  %v3213_v17 = vld [vmem:[#allocation2 + $0x4] ss:$16 sps:$4 sm:$0xff]   ;;  %v3208_v18 = vld [vmem:[%s4404_s1 + $0x6c] ss:$16 sps:$4 sm:$0xff]   ;;  %v3210_v21 = vld [vmem:[%s4404_s1 + $0x68] ss:$16 sps:$4 sm:$0xff]  }
  0x3e   : > { %517 = vmatprep.subr.bf16.mxu0 %v3185_v5  ;;  %v3192_v19 = vld [vmem:[%s3716_s15 + $0x8] sm:$0xff]   ;;  %v3219_v20 = vld [vmem:[#allocation2 + $0x24] ss:$16 sps:$4 sm:$0xff]   ;;  %v3217_v23 = vld [vmem:[#allocation2 + $0x20] ss:$16 sps:$4 sm:$0xff]   ;;  %s4031_s23 = scalar_lea.vmem [#allocation5], %s2778_s22 }
  0x3f   : > { %629 = vmatpush1.bf16.msra.mxu1 %v3203_v13  ;;  %v3216_v22 = vld [vmem:[#allocation2 + $0xc] ss:$16 sps:$4 sm:$0xff]   ;;  %v3225_v24 = vld [vmem:[#allocation2 + $0x44] ss:$16 sps:$4 sm:$0xff]   ;;  %v3214_v25 = vld [vmem:[#allocation2 + $0x8] ss:$16 sps:$4 sm:$0xff]  }
  0x40   : > { %630 = vmatprep.subr.bf16.mxu1 %v3204_v14  ;;  %v3222_v26 = vld [vmem:[#allocation2 + $0x2c] ss:$16 sps:$4 sm:$0xff]   ;;  %v3223_v27 = vld [vmem:[#allocation2 + $0x40] ss:$16 sps:$4 sm:$0xff]   ;;  %v3231_v28 = vld [vmem:[#allocation2 + $0x64] ss:$16 sps:$4 sm:$0xff]  }
  0x41   : > { %518 = vmatpush1.bf16.msra.mxu0 %v3187_v6  ;;  %v3193_v29 = vld [vmem:[%s3716_s15 + $0x10] sm:$0xff]   ;;  %v3220_v30 = vld [vmem:[#allocation2 + $0x28] ss:$16 sps:$4 sm:$0xff]   ;;  %v3228_v31 = vld [vmem:[#allocation2 + $0x4c] ss:$16 sps:$4 sm:$0xff]   ;;  %s2981_s8 = sshll.u32 %s3631_s28, 13 }
  0x42   : > { %519 = vmatprep.subr.bf16.mxu0 %v3188_v7  ;;  %v3229_v32 = vld [vmem:[#allocation2 + $0x60] ss:$16 sps:$4 sm:$0xff]   ;;  %v3237_v33 = vld [vmem:[#allocation2 + $0x84] ss:$16 sps:$4 sm:$0xff]   ;;  %v3226_v34 = vld [vmem:[#allocation2 + $0x48] ss:$16 sps:$4 sm:$0xff]   ;;  %s4256_s17 = scalar_lea.hbm %s4408_s5, %s2981_s8 }
  0x43   : > { %631 = vmatpush1.bf16.msra.mxu1 %v3206_v15  ;;  %v3234_v35 = vld [vmem:[#allocation2 + $0x6c] ss:$16 sps:$4 sm:$0xff]   ;;  %v3235_v36 = vld [vmem:[#allocation2 + $0x80] ss:$16 sps:$4 sm:$0xff]   ;;  %v3243_v37 = vld [vmem:[#allocation2 + $0xa4] ss:$16 sps:$4 sm:$0xff]  }
  0x44   : > { %632 = vmatprep.subr.bf16.mxu1 %v3208_v18  ;;  %v3194_v38 = vld [vmem:[%s3716_s15 + $0x18] sm:$0xff]   ;;  %v3241_v41 = vld [vmem:[#allocation2 + $0xa0] ss:$16 sps:$4 sm:$0xff]   ;;  %v3249_v42 = vld [vmem:[#allocation2 + $0xc4] ss:$16 sps:$4 sm:$0xff]   ;;  %s2609_s9 = sshll.u32 %s4031_s23, 4  ;;  %s4258_s9 = int_to_ptr.vmem [resolvable:$true] %s2609_s9 }
  0x45   : > { %520 = vmatpush1.bf16.msra.mxu0 %v3190_v8  ;;  %v3232_v39 = vld [vmem:[#allocation2 + $0x68] ss:$16 sps:$4 sm:$0xff]   ;;  %v3240_v40 = vld [vmem:[#allocation2 + $0x8c] ss:$16 sps:$4 sm:$0xff]   ;;  %v3247_v45 = vld [vmem:[#allocation2 + $0xc0] ss:$16 sps:$4 sm:$0xff]  }
  0x46   : > { %1625 = vmatprep.subr.bf16.mxu0 %v3213_v17  ;;  %v3238_v43 = vld [vmem:[#allocation2 + $0x88] ss:$16 sps:$4 sm:$0xff]   ;;  %v3246_v44 = vld [vmem:[#allocation2 + $0xac] ss:$16 sps:$4 sm:$0xff]   ;;  %v3255_v46 = vld [vmem:[#allocation2 + $0xe4] ss:$16 sps:$4 sm:$0xff]  }
  0x47   : > { %633 = vmatpush1.bf16.msra.mxu1 %v3210_v21  ;;  %v3195_v47 = vld [vmem:[%s3716_s15 + $0x20] sm:$0xff]   ;;  %v3244_v48 = vld [vmem:[#allocation2 + $0xa8] ss:$16 sps:$4 sm:$0xff]   ;;  %v3252_v49 = vld [vmem:[#allocation2 + $0xcc] ss:$16 sps:$4 sm:$0xff]   ;;  %s3431_s18 = scalar_lea.vmem %s4258_s9, 8192 }
  0x48   : > { %2807 = vmatmul.mubr.msk.bf16.vlgmr.msra.gmra.mrb[0].mxu0 %vm488_vm0, %v3191_v11  ;;  %1851 = vmatprep.subr.bf16.mxu1 %v3216_v22  ;;  %v3253_v50 = vld [vmem:[#allocation2 + $0xe0] ss:$16 sps:$4 sm:$0xff]   ;;  %v3261_v51 = vld [vmem:[#allocation2 + $0x104] ss:$16 sps:$4 sm:$0xff]   ;;  %v3250_v52 = vld [vmem:[#allocation2 + $0xc8] ss:$16 sps:$4 sm:$0xff]   ;;  %p3432_p6 = scmp.ne.s32.totalorder %s4258_s9, %s3431_s18 }
  0x49   : > { %555 = vmatprep.mubr.bf16.mxu0 %v3562_v0  ;;  %1626 = vmatpush1.bf16.msra.mxu0 %v3211_v16  ;;  %v3258_v53 = vld [vmem:[#allocation2 + $0xec] ss:$16 sps:$4 sm:$0xff]   ;;  %v3259_v54 = vld [vmem:[#allocation2 + $0x100] ss:$16 sps:$4 sm:$0xff]   ;;  %v3267_v55 = vld [vmem:[#allocation2 + $0x124] ss:$16 sps:$4 sm:$0xff]  }
  0x4a   : > { %1627 = vmatprep.subr.bf16.mxu0 %v3219_v20  ;;  %2815 = vmatmul.mubr.msk.bf16.vlgmr.msra.gmra.mrb[0].mxu1 %vm488_vm0, %v3191_v11  ;;  %v3196_v56 = vld [vmem:[%s3716_s15 + $0x28] sm:$0xff]   ;;  %v3265_v59 = vld [vmem:[#allocation2 + $0x120] ss:$16 sps:$4 sm:$0xff]   ;;  %v3273_v60 = vld [vmem:[#allocation2 + $0x144] ss:$16 sps:$4 sm:$0xff]   ;;  %p4421_p9 = scmp.ne.s32.totalorder %s4414_s11, 0 }
  0x4b   : > { %668 = vmatprep.mubr.bf16.mxu1 %v3562_v0  ;;  %1852 = vmatpush1.bf16.msra.mxu1 %v3214_v25  ;;  %v3256_v57 = vld [vmem:[#allocation2 + $0xe8] ss:$16 sps:$4 sm:$0xff]   ;;  %v3264_v58 = vld [vmem:[#allocation2 + $0x10c] ss:$16 sps:$4 sm:$0xff]   ;;  %v3271_v63 = vld [vmem:[#allocation2 + $0x140] ss:$16 sps:$4 sm:$0xff]  }
  0x4c   : > { %1853 = vmatprep.subr.bf16.mxu1 %v3222_v26  ;;  %v3262_v61 = vld [vmem:[#allocation2 + $0x108] ss:$16 sps:$4 sm:$0xff]   ;;  %v3270_v62 = vld [vmem:[#allocation2 + $0x12c] ss:$16 sps:$4 sm:$0xff]   ;;  %v3279_v1 = vld [vmem:[#allocation2 + $0x164] ss:$16 sps:$4 sm:$0xff]   ;;  %p3433_p10 = pnand %p3432_p6, %p4421_p9 }
  0x4d   : > { %1628 = vmatpush1.bf16.msra.mxu0 %v3217_v23  ;;  %v3200_v2 = vld [vmem:[%s3716_s15 + $0x30] sm:$0xff]   ;;  %v3268_v3 = vld [vmem:[#allocation2 + $0x128] ss:$16 sps:$4 sm:$0xff]   ;;  %v3276_v4 = vld [vmem:[#allocation2 + $0x14c] ss:$16 sps:$4 sm:$0xff]  }
  0x4e   : > { %1629 = vmatprep.subr.bf16.mxu0 %v3225_v24  ;;  %v3277_v5 = vld [vmem:[#allocation2 + $0x160] ss:$16 sps:$4 sm:$0xff]   ;;  %v3285_v6 = vld [vmem:[#allocation2 + $0x184] ss:$16 sps:$4 sm:$0xff]   ;;  %v3274_v7 = vld [vmem:[#allocation2 + $0x148] ss:$16 sps:$4 sm:$0xff]   ;;  %p3434_p12 = pneg %p3433_p10 }
  0x4f   : > { %1854 = vmatpush1.bf16.msra.mxu1 %v3220_v30  ;;  %v3282_v8 = vld [vmem:[#allocation2 + $0x16c] ss:$16 sps:$4 sm:$0xff]   ;;  %v3283_v9 = vld [vmem:[#allocation2 + $0x180] ss:$16 sps:$4 sm:$0xff]   ;;  %v3291_v10 = vld [vmem:[#allocation2 + $0x1a4] ss:$16 sps:$4 sm:$0xff]  }
  0x50   : > { %2808 = vmatmul.mubr.msk.bf16.gmra.mrb[4].mxu0 %vm488_vm0, %v3192_v19  ;;  %1855 = vmatprep.subr.bf16.mxu1 %v3228_v31  ;;  %v3207_v11 = vld [vmem:[%s3716_s15 + $0x38] sm:$0xff]   ;;  %v3289_v14 = vld [vmem:[#allocation2 + $0x1a0] ss:$16 sps:$4 sm:$0xff]   ;;  %v3297_v18 = vld [vmem:[#allocation2 + $0x1c4] ss:$16 sps:$4 sm:$0xff]   ;;  %s2585_s15 = scalar_lea.sflag [#allocation4], %s3967_s20 }
  0x51   : > { %565 = vmatprep.mubr.bf16.mxu0 %v3562_v0  ;;  %1630 = vmatpush1.bf16.msra.mxu0 %v3223_v27  ;;  %v3280_v12 = vld [vmem:[#allocation2 + $0x168] ss:$16 sps:$4 sm:$0xff]   ;;  %v3288_v13 = vld [vmem:[#allocation2 + $0x18c] ss:$16 sps:$4 sm:$0xff]   ;;  %v3295_v20 = vld [vmem:[#allocation2 + $0x1c0] ss:$16 sps:$4 sm:$0xff]   ;;  %v348_v27 = vlaneseq }
  0x52   : > { %1631 = vmatprep.subr.bf16.mxu0 %v3231_v28  ;;  %2816 = vmatmul.mubr.msk.bf16.gmra.mrb[4].mxu1 %vm488_vm0, %v3192_v19  ;;  %v3286_v15 = vld [vmem:[#allocation2 + $0x188] ss:$16 sps:$4 sm:$0xff]   ;;  %v3294_v16 = vld [vmem:[#allocation2 + $0x1ac] ss:$16 sps:$4 sm:$0xff]   ;;  %v3303_v22 = vld [vmem:[#allocation2 + $0x1e4] ss:$16 sps:$4 sm:$0xff]  }
  0x53   : > { %678 = vmatprep.mubr.bf16.mxu1 %v3562_v0  ;;  %1856 = vmatpush1.bf16.msra.mxu1 %v3226_v34  ;;  %v3292_v17 = vld [vmem:[#allocation2 + $0x1a8] ss:$16 sps:$4 sm:$0xff]   ;;  %v3300_v19 = vld [vmem:[#allocation2 + $0x1cc] ss:$16 sps:$4 sm:$0xff]   ;;  %v3301_v24 = vld [vmem:[#allocation2 + $0x1e0] ss:$16 sps:$4 sm:$0xff]  }
  0x54   : > { %1857 = vmatprep.subr.bf16.mxu1 %v3234_v35  ;;  %v3298_v21 = vld [vmem:[#allocation2 + $0x1c8] ss:$16 sps:$4 sm:$0xff]   ;;  %v3306_v23 = vld [vmem:[#allocation2 + $0x1ec] ss:$16 sps:$4 sm:$0xff]   ;;  %v3790_v28 = vshrl.u32 %v348_v27, 7 }
  0x55   : > { %1632 = vmatpush1.bf16.msra.mxu0 %v3229_v32  ;;  %v3304_v25 = vld [vmem:[#allocation2 + $0x1e8] ss:$16 sps:$4 sm:$0xff]   ;;  %v3312_v26 = vld [vmem:[#allocation2 + $0x20c] ss:$16 sps:$4 sm:$0xff]   ;;  %v346_v30 = vld [vmem:[%s4405_s2] sm:$0xf] }
  0x56   : > { %1633 = vmatprep.subr.bf16.mxu0 %v3237_v33  ;;  %v354_v31 = vsub.s32 1, %v3790_v28 }
  0x57   : > { %1858 = vmatpush1.bf16.msra.mxu1 %v3232_v39 }
  0x58   : > { %2809 = vmatmul.mubr.msk.bf16.gmra.mrb[8].mxu0 %vm488_vm0, %v3193_v29  ;;  %1859 = vmatprep.subr.bf16.mxu1 %v3240_v40  ;;  %v3803_v33 = vrot.slane %v346_v30, %v354_v31 }
  0x59   : > { %575 = vmatprep.mubr.bf16.mxu0 %v3562_v0  ;;  %1634 = vmatpush1.bf16.msra.mxu0 %v3235_v36 }
  0x5a   : > { %1635 = vmatprep.subr.bf16.mxu0 %v3243_v37  ;;  %2817 = vmatmul.mubr.msk.bf16.gmra.mrb[8].mxu1 %vm488_vm0, %v3193_v29  ;;  %v350_v29 = vsub.s32 0, %v3790_v28 }
  0x5b   : > { %688 = vmatprep.mubr.bf16.mxu1 %v3562_v0  ;;  %1860 = vmatpush1.bf16.msra.mxu1 %v3238_v43 }
  0x5c   : > { %1861 = vmatprep.subr.bf16.mxu1 %v3246_v44  ;;  %v3799_v32 = vrot.slane %v346_v30, %v350_v29  ;;  %v358_v44 = vsub.s32 2, %v3790_v28 }
  0x5d   : > { %1636 = vmatpush1.bf16.msra.mxu0 %v3241_v41 }
  0x5e   : > { %1637 = vmatprep.subr.bf16.mxu0 %v3249_v42 }
  0x5f   : > { %1862 = vmatpush1.bf16.msra.mxu1 %v3244_v48 }
  0x60   : > { %2810 = vmatmul.mubr.msk.bf16.gmra.mrb[12].mxu0 %vm488_vm0, %v3194_v38  ;;  %1863 = vmatprep.subr.bf16.mxu1 %v3252_v49 }
  0x61   : > { %585 = vmatprep.mubr.bf16.mxu0 %v3562_v0  ;;  %1638 = vmatpush1.bf16.msra.mxu0 %v3247_v45 }
  0x62   : > { %1639 = vmatprep.subr.bf16.mxu0 %v3255_v46  ;;  %2818 = vmatmul.mubr.msk.bf16.gmra.mrb[12].mxu1 %vm488_vm0, %v3194_v38 }
  0x63   : > { %698 = vmatprep.mubr.bf16.mxu1 %v3562_v0  ;;  %1864 = vmatpush1.bf16.msra.mxu1 %v3250_v52  ;;  %v3310_v52 = vld [vmem:[#allocation2 + $0x208] ss:$16 sps:$4 sm:$0xff]  }
  0x64   : > { %1865 = vmatprep.subr.bf16.mxu1 %v3258_v53 }
  0x65   : > { %1640 = vmatpush1.bf16.msra.mxu0 %v3253_v50 }
  0x66   : > { %1641 = vmatprep.subr.bf16.mxu0 %v3261_v51  ;;  %v3307_v51 = vld [vmem:[#allocation2 + $0x200] ss:$16 sps:$4 sm:$0xff]  }
  0x67   : > { %1866 = vmatpush1.bf16.msra.mxu1 %v3256_v57  ;;  %v3814_v57 = vrot.slane %v346_v30, %v358_v44 }
  0x68   : > { %2811 = vmatmul.mubr.msk.bf16.gmra.mrb[16].mxu0 %vm488_vm0, %v3195_v47  ;;  %1867 = vmatprep.subr.bf16.mxu1 %v3264_v58 }
  0x69   : > { %595 = vmatprep.mubr.bf16.mxu0 %v3562_v0  ;;  %1642 = vmatpush1.bf16.msra.mxu0 %v3259_v54 }
  0x6a   : > { %1643 = vmatprep.subr.bf16.mxu0 %v3267_v55  ;;  %2819 = vmatmul.mubr.msk.bf16.gmra.mrb[16].mxu1 %vm488_vm0, %v3195_v47  ;;  %v362_v47 = vsub.s32 3, %v3790_v28  ;;  %v3315_v55 = vld [vmem:[#allocation2 + $0x224] ss:$16 sps:$4 sm:$0xff]  }
  0x6b   : > { %708 = vmatprep.mubr.bf16.mxu1 %v3562_v0  ;;  %1868 = vmatpush1.bf16.msra.mxu1 %v3262_v61 }
  0x6c   : > { %1869 = vmatprep.subr.bf16.mxu1 %v3270_v62 }
  0x6d   : > { %1644 = vmatpush1.bf16.msra.mxu0 %v3265_v59 }
  0x6e   : > { %1645 = vmatprep.subr.bf16.mxu0 %v3273_v60  ;;  %v3819_v60 = vrot.slane %v346_v30, %v362_v47 }
  0x6f   : > { %1870 = vmatpush1.bf16.msra.mxu1 %v3268_v3  ;;  %v3321_v3 = vld [vmem:[#allocation2 + $0x244] ss:$16 sps:$4 sm:$0xff]  }
  0x70   : > { %2812 = vmatmul.mubr.msk.bf16.gmra.mrb[20].mxu0 %vm488_vm0, %v3196_v56  ;;  %1871 = vmatprep.subr.bf16.mxu1 %v3276_v4 }
  0x71   : > { %605 = vmatprep.mubr.bf16.mxu0 %v3562_v0  ;;  %1646 = vmatpush1.bf16.msra.mxu0 %v3271_v63  ;;  %v3313_v63 = vld [vmem:[#allocation2 + $0x220] ss:$16 sps:$4 sm:$0xff]  }
  0x72   : > { %1647 = vmatprep.subr.bf16.mxu0 %v3279_v1  ;;  %2820 = vmatmul.mubr.msk.bf16.gmra.mrb[20].mxu1 %vm488_vm0, %v3196_v56  ;;  %v3318_v56 = vld [vmem:[#allocation2 + $0x22c] ss:$16 sps:$4 sm:$0xff]  }
  0x73   : > { %718 = vmatprep.mubr.bf16.mxu1 %v3562_v0  ;;  %1872 = vmatpush1.bf16.msra.mxu1 %v3274_v7  ;;  %v3324_v7 = vld [vmem:[#allocation2 + $0x24c] ss:$16 sps:$4 sm:$0xff]  }
  0x74   : > { %1873 = vmatprep.subr.bf16.mxu1 %v3282_v8 }
  0x75   : > { %1648 = vmatpush1.bf16.msra.mxu0 %v3277_v5 }
  0x76   : > { %1649 = vmatprep.subr.bf16.mxu0 %v3285_v6 }
  0x77   : > { %1874 = vmatpush1.bf16.msra.mxu1 %v3280_v12 }
  0x78   : > { %2813 = vmatmul.mubr.msk.bf16.gmra.mrb[24].mxu0 %vm488_vm0, %v3200_v2  ;;  %1875 = vmatprep.subr.bf16.mxu1 %v3288_v13 }
  0x79   : > { %615 = vmatprep.mubr.bf16.mxu0 %v3562_v0  ;;  %1650 = vmatpush1.bf16.msra.mxu0 %v3283_v9 }
  0x7a   : > { %1651 = vmatprep.subr.bf16.mxu0 %v3291_v10  ;;  %2821 = vmatmul.mubr.msk.bf16.gmra.mrb[24].mxu1 %vm488_vm0, %v3200_v2  ;;  %v3316_v2 = vld [vmem:[#allocation2 + $0x228] ss:$16 sps:$4 sm:$0xff]  }
  0x7b   : > { %728 = vmatprep.mubr.bf16.mxu1 %v3562_v0  ;;  %1876 = vmatpush1.bf16.msra.mxu1 %v3286_v15  ;;  %v3309_v0 = vld [vmem:[#allocation2 + $0x204] ss:$16 sps:$4 sm:$0xff]  }
  0x7c   : > { %1877 = vmatprep.subr.bf16.mxu1 %v3294_v16 }
  0x7d   : > { %1652 = vmatpush1.bf16.msra.mxu0 %v3289_v14 }
  0x7e   : > { %1653 = vmatprep.subr.bf16.mxu0 %v3297_v18 }
  0x7f   : > { %1878 = vmatpush1.bf16.msra.mxu1 %v3292_v17 }
  0x80   : > { %2814 = vmatmul.mubr.msk.bf16.gmra.mrb[28].mxu0 %vm488_vm0, %v3207_v11  ;;  %1879 = vmatprep.subr.bf16.mxu1 %v3300_v19 }
  0x81   : > { %1654 = vmatpush1.bf16.msra.mxu0 %v3295_v20  ;;  %v3319_v20 = vld [vmem:[#allocation2 + $0x240] ss:$16 sps:$4 sm:$0xff]  }
  0x82   : > { %2822 = vmatmul.mubr.msk.bf16.gmra.mrb[28].mxu1 %vm488_vm0, %v3207_v11  ;;  %1655 = vmatprep.subr.bf16.mxu0 %v3303_v22 }
  0x83   : > { %1880 = vmatpush1.bf16.msra.mxu1 %v3298_v21  ;;  %v3322_v21 = vld [vmem:[#allocation2 + $0x248] ss:$16 sps:$4 sm:$0xff]  }
  0x84   : > { %1881 = vmatprep.subr.bf16.mxu1 %v3306_v23 }
  0x85   : > { %1656 = vmatpush1.bf16.msra.mxu0 %v3301_v24 }
  0x86   : > { %1738 = vmatprep.subr.bf16.mxu0 %v3309_v0  ;;  %v3327_v0 = vld [vmem:[#allocation2 + $0x264] ss:$16 sps:$4 sm:$0xff]  }
  0x87   : > { %1882 = vmatpush1.bf16.msra.mxu1 %v3304_v25 }
  0x88   : > { %1964 = vmatprep.subr.bf16.mxu1 %v3312_v26  ;;  %v3330_v26 = vld [vmem:[#allocation2 + $0x26c] ss:$16 sps:$4 sm:$0xff]  }
 0x11b   : > { %v547_v34 = vpop.f32.mrb[0].mxu0 }
 0x11c   : > { %v548_v35 = vadd.f32 %v547_v34, %v3799_v32  ;;  %v549_v36 = vpop.f32.mrb[1].mxu0 }
 0x11d   : > { %v550_v37 = vadd.f32 %v549_v36, %v3803_v33  ;;  %v551_v38 = vpop.f32.mrb[2].mxu0  ;;  %v660_v4 = vpop.f32.mrb[0].mxu1 }
 0x11e   : > { %v552_v39 = vadd.f32 %v551_v38, %v3799_v32  ;;  %v553_v40 = vpop.f32.mrb[3].mxu0  ;;  %v739_v42 = vmax.f32 %v548_v35, 0.0  ;;  %v661_v8 = vadd.f32 %v660_v4, %v3814_v57  ;;  %v662_v9 = vpop.f32.mrb[1].mxu1 }
 0x11f   : > { %v554_v41 = vadd.f32 %v553_v40, %v3803_v33  ;;  %v740_v45 = vmax.f32 %v550_v37, 0.0  ;;  %v663_v12 = vadd.f32 %v662_v9, %v3819_v60  ;;  %v664_v13 = vpop.f32.mrb[2].mxu1  ;;  %v3342_v9 = vld [vmem:[#allocation2 + $0x2ac] ss:$16 sps:$4 sm:$0xff]  }
 0x120   : > { %v743_v43 = vmax.f32 %v552_v39, 0.0  ;;  %v741_v15 = vmax.f32 %v661_v8, 0.0  ;;  %v665_v16 = vadd.f32 %v664_v13, %v3814_v57  ;;  %v666_v17 = vpop.f32.mrb[3].mxu1  ;;  %v3325_v39 = vld [vmem:[#allocation2 + $0x260] ss:$16 sps:$4 sm:$0xff]  }
 0x121   : > { %v744_v46 = vmax.f32 %v554_v41, 0.0  ;;  %v742_v22 = vmax.f32 %v663_v12, 0.0  ;;  %v667_v23 = vadd.f32 %v666_v17, %v3819_v60  ;;  %v3339_v8 = vld [vmem:[#allocation2 + $0x2a4] ss:$16 sps:$4 sm:$0xff]  }
 0x122   : > { %v803_v48 = vpack.c.bf16 %v743_v43, %v739_v42  ;;  %v745_v30 = vmax.f32 %v665_v16, 0.0  ;;  %v3328_v42 = vld [vmem:[#allocation2 + $0x268] ss:$16 sps:$4 sm:$0xff]   ;;  %v3333_v43 = vld [vmem:[#allocation2 + $0x284] ss:$16 sps:$4 sm:$0xff]  }
 0x123   : > { %v804_v49 = vpack.c.bf16 %v744_v46, %v740_v45  ;;  %v557_v50 = vpop.f32.mrb[4].mxu0  ;;  %v746_v36 = vmax.f32 %v667_v23, 0.0  ;;  %v3337_v16 = vld [vmem:[#allocation2 + $0x2a0] ss:$16 sps:$4 sm:$0xff]  }
 0x124   : > { %v558_v53 = vadd.f32 %v557_v50, %v3799_v32  ;;  %v559_v54 = vpop.f32.mrb[5].mxu0  ;;  %v3830_v40 = vpack.c.bf16 %v745_v30, %v741_v15  ;;  %v3336_v50 = vld [vmem:[#allocation2 + $0x28c] ss:$16 sps:$4 sm:$0xff]  }
 0x125   : > { %v560_v58 = vadd.f32 %v559_v54, %v3803_v33  ;;  %v561_v59 = vpop.f32.mrb[6].mxu0  ;;  %1657 = vmatprep.mubr.bf16.mxu0 %v804_v49  ;;  %1883 = vmatprep.mubr.bf16.mxu1 %v804_v49  ;;  %v3833_v45 = vpack.c.bf16 %v746_v36, %v742_v22  ;;  %v670_v46 = vpop.f32.mrb[4].mxu1 }
 0x126   : > { %v562_v61 = vadd.f32 %v561_v59, %v3799_v32  ;;  %v563_v62 = vpop.f32.mrb[7].mxu0  ;;  %1658 = vmatmul.mubr.bf16.vlgmr.msra.gmra.mrb[32].mxu0 %v803_v48  ;;  %1884 = vmatmul.mubr.bf16.vlgmr.msra.gmra.mrb[32].mxu1 %v803_v48  ;;  %v747_v5 = vmax.f32 %v558_v53, 0.0 }
 0x127   : > { %v564_v1 = vadd.f32 %v563_v62, %v3803_v33  ;;  %1739 = vmatpush1.bf16.msra.mxu0 %v3307_v51  ;;  %1965 = vmatpush1.bf16.msra.mxu1 %v3310_v52  ;;  %v748_v10 = vmax.f32 %v560_v58, 0.0  ;;  %v671_v51 = vadd.f32 %v670_v46, %v3814_v57  ;;  %v672_v52 = vpop.f32.mrb[5].mxu1  ;;  %v3343_v46 = vld [vmem:[#allocation2 + $0x2c0] ss:$16 sps:$4 sm:$0xff]  }
 0x128   : > { %v751_v6 = vmax.f32 %v562_v61, 0.0  ;;  %1740 = vmatprep.subr.bf16.mxu0 %v3315_v55  ;;  %1966 = vmatprep.subr.bf16.mxu1 %v3318_v56  ;;  %v673_v55 = vadd.f32 %v672_v52, %v3819_v60  ;;  %v674_v56 = vpop.f32.mrb[6].mxu1 }
 0x129   : > { %v752_v11 = vmax.f32 %v564_v1, 0.0  ;;  %v749_v59 = vmax.f32 %v671_v51, 0.0  ;;  %v675_v61 = vadd.f32 %v674_v56, %v3814_v57  ;;  %v676_v62 = vpop.f32.mrb[7].mxu1 }
 0x12a   : > { %v807_v14 = vpack.c.bf16 %v751_v6, %v747_v5  ;;  %v750_v4 = vmax.f32 %v673_v55, 0.0  ;;  %v677_v5 = vadd.f32 %v676_v62, %v3819_v60 }
 0x12b   : > { %v808_v18 = vpack.c.bf16 %v752_v11, %v748_v10  ;;  %1741 = vmatpush1.bf16.msra.mxu0 %v3313_v63  ;;  %1967 = vmatpush1.bf16.msra.mxu1 %v3316_v2  ;;  %v567_v19 = vpop.f32.mrb[8].mxu0  ;;  %v3331_v2 = vld [vmem:[#allocation2 + $0x280] ss:$16 sps:$4 sm:$0xff]   ;;  %v753_v10 = vmax.f32 %v675_v61, 0.0 }
 0x12c   : > { %v568_v24 = vadd.f32 %v567_v19, %v3799_v32  ;;  %v569_v25 = vpop.f32.mrb[9].mxu0  ;;  %1742 = vmatprep.subr.bf16.mxu0 %v3321_v3  ;;  %1968 = vmatprep.subr.bf16.mxu1 %v3324_v7  ;;  %v3334_v3 = vld [vmem:[#allocation2 + $0x288] ss:$16 sps:$4 sm:$0xff]   ;;  %v754_v13 = vmax.f32 %v677_v5, 0.0 }
 0x12d   : > { %v570_v34 = vadd.f32 %v569_v25, %v3803_v33  ;;  %v571_v35 = vpop.f32.mrb[10].mxu0  ;;  %1667 = vmatprep.mubr.bf16.mxu0 %v808_v18  ;;  %1893 = vmatprep.mubr.bf16.mxu1 %v808_v18  ;;  %v3842_v17 = vpack.c.bf16 %v753_v10, %v749_v59  ;;  %v3340_v19 = vld [vmem:[#allocation2 + $0x2a8] ss:$16 sps:$4 sm:$0xff]   ;;  %v680_v22 = vpop.f32.mrb[8].mxu1  ;;  %v3348_v25 = vld [vmem:[#allocation2 + $0x2cc] ss:$16 sps:$4 sm:$0xff]  }
 0x12e   : > { %v572_v37 = vadd.f32 %v571_v35, %v3799_v32  ;;  %v573_v38 = vpop.f32.mrb[11].mxu0  ;;  %1668 = vmatmul.mubr.bf16.gmra.mrb[36].mxu0 %v807_v14  ;;  %1894 = vmatmul.mubr.bf16.gmra.mrb[36].mxu1 %v807_v14  ;;  %v755_v48 = vmax.f32 %v568_v24, 0.0 }
 0x12f   : > { %v574_v41 = vadd.f32 %v573_v38, %v3803_v33  ;;  %1743 = vmatpush1.bf16.msra.mxu0 %v3319_v20  ;;  %1969 = vmatpush1.bf16.msra.mxu1 %v3322_v21  ;;  %v756_v53 = vmax.f32 %v570_v34, 0.0  ;;  %v3345_v20 = vld [vmem:[#allocation2 + $0x2c4] ss:$16 sps:$4 sm:$0xff]   ;;  %v3845_v21 = vpack.c.bf16 %v754_v13, %v750_v4 }
 0x130   : > { %v759_v49 = vmax.f32 %v572_v37, 0.0  ;;  %1744 = vmatprep.subr.bf16.mxu0 %v3327_v0  ;;  %1970 = vmatprep.subr.bf16.mxu1 %v3330_v26  ;;  %v681_v0 = vadd.f32 %v680_v22, %v3814_v57  ;;  %v682_v26 = vpop.f32.mrb[9].mxu1  ;;  %v3357_v4 = vld [vmem:[#allocation2 + $0x304] ss:$16 sps:$4 sm:$0xff]  }
 0x131   : > { %v760_v54 = vmax.f32 %v574_v41, 0.0  ;;  %v683_v35 = vadd.f32 %v682_v26, %v3819_v60  ;;  %v684_v36 = vpop.f32.mrb[10].mxu1 }
 0x132   : > { %v811_v58 = vpack.c.bf16 %v759_v49, %v755_v48  ;;  %v757_v38 = vmax.f32 %v681_v0, 0.0  ;;  %v686_v41 = vpop.f32.mrb[11].mxu1  ;;  %v3346_v48 = vld [vmem:[#allocation2 + $0x2c8] ss:$16 sps:$4 sm:$0xff]  }
 0x133   : > { %v812_v63 = vpack.c.bf16 %v760_v54, %v756_v53  ;;  %1745 = vmatpush1.bf16.msra.mxu0 %v3325_v39  ;;  %1971 = vmatpush1.bf16.msra.mxu1 %v3328_v42  ;;  %v577_v1 = vpop.f32.mrb[12].mxu0  ;;  %v685_v39 = vadd.f32 %v684_v36, %v3814_v57  ;;  %v758_v49 = vmax.f32 %v683_v35, 0.0  ;;  %v3351_v53 = vld [vmem:[#allocation2 + $0x2e4] ss:$16 sps:$4 sm:$0xff]   ;;  %v3354_v54 = vld [vmem:[#allocation2 + $0x2ec] ss:$16 sps:$4 sm:$0xff]  }
 0x134   : > { %v578_v6 = vadd.f32 %v577_v1, %v3799_v32  ;;  %v579_v7 = vpop.f32.mrb[13].mxu0  ;;  %1746 = vmatprep.subr.bf16.mxu0 %v3333_v43  ;;  %1972 = vmatprep.subr.bf16.mxu1 %v3336_v50  ;;  %v687_v50 = vadd.f32 %v686_v41, %v3819_v60  ;;  %v3363_v35 = vld [vmem:[#allocation2 + $0x324] ss:$16 sps:$4 sm:$0xff]   ;;  %v3366_v36 = vld [vmem:[#allocation2 + $0x32c] ss:$16 sps:$4 sm:$0xff]  }
 0x135   : > { %v580_v11 = vadd.f32 %v579_v7, %v3803_v33  ;;  %v581_v12 = vpop.f32.mrb[14].mxu0  ;;  %1677 = vmatprep.mubr.bf16.mxu0 %v812_v63  ;;  %1903 = vmatprep.mubr.bf16.mxu1 %v812_v63  ;;  %v761_v55 = vmax.f32 %v685_v39, 0.0  ;;  %v3349_v63 = vld [vmem:[#allocation2 + $0x2e0] ss:$16 sps:$4 sm:$0xff]  }
 0x136   : > { %v582_v14 = vadd.f32 %v581_v12, %v3799_v32  ;;  %v583_v15 = vpop.f32.mrb[15].mxu0  ;;  %1678 = vmatmul.mubr.bf16.gmra.mrb[40].mxu0 %v811_v58  ;;  %1904 = vmatmul.mubr.bf16.gmra.mrb[40].mxu1 %v811_v58  ;;  %v763_v23 = vmax.f32 %v578_v6, 0.0  ;;  %v762_v59 = vmax.f32 %v687_v50, 0.0  ;;  %v690_v6 = vpop.f32.mrb[12].mxu1  ;;  %v3364_v50 = vld [vmem:[#allocation2 + $0x328] ss:$16 sps:$4 sm:$0xff]  }
 0x137   : > { %v584_v18 = vadd.f32 %v583_v15, %v3803_v33  ;;  %1747 = vmatpush1.bf16.msra.mxu0 %v3331_v2  ;;  %1973 = vmatpush1.bf16.msra.mxu1 %v3334_v3  ;;  %v764_v30 = vmax.f32 %v580_v11, 0.0  ;;  %v3854_v1 = vpack.c.bf16 %v761_v55, %v757_v38  ;;  %v3352_v3 = vld [vmem:[#allocation2 + $0x2e8] ss:$16 sps:$4 sm:$0xff]   ;;  %v691_v10 = vadd.f32 %v690_v6, %v3814_v57  ;;  %v692_v11 = vpop.f32.mrb[13].mxu1 }
 0x138   : > { %v767_v24 = vmax.f32 %v582_v14, 0.0  ;;  %1748 = vmatprep.subr.bf16.mxu0 %v3339_v8  ;;  %1974 = vmatprep.subr.bf16.mxu1 %v3342_v9  ;;  %v3857_v5 = vpack.c.bf16 %v762_v59, %v758_v49  ;;  %v3360_v9 = vld [vmem:[#allocation2 + $0x30c] ss:$16 sps:$4 sm:$0xff]   ;;  %v693_v14 = vadd.f32 %v692_v11, %v3819_v60  ;;  %v694_v15 = vpop.f32.mrb[14].mxu1  ;;  %v3370_v11 = vld [vmem:[#allocation2 + $0x348] ss:$16 sps:$4 sm:$0xff]  }
 0x139   : > { %v768_v34 = vmax.f32 %v584_v18, 0.0  ;;  %v765_v18 = vmax.f32 %v691_v10, 0.0  ;;  %v3367_v10 = vld [vmem:[#allocation2 + $0x340] ss:$16 sps:$4 sm:$0xff]  }
 0x13a   : > { %v815_v37 = vpack.c.bf16 %v767_v24, %v763_v23  ;;  %v3355_v24 = vld [vmem:[#allocation2 + $0x300] ss:$16 sps:$4 sm:$0xff]   ;;  %v766_v0 = vmax.f32 %v693_v14, 0.0 }
 0x13b   : > { %v816_v42 = vpack.c.bf16 %v768_v34, %v764_v30  ;;  %1749 = vmatpush1.bf16.msra.mxu0 %v3337_v16  ;;  %1975 = vmatpush1.bf16.msra.mxu1 %v3340_v19  ;;  %v587_v43 = vpop.f32.mrb[16].mxu0  ;;  %v695_v19 = vadd.f32 %v694_v15, %v3814_v57 }
 0x13c   : > { %v588_v51 = vadd.f32 %v587_v43, %v3799_v32  ;;  %v589_v52 = vpop.f32.mrb[17].mxu0  ;;  %1750 = vmatprep.subr.bf16.mxu0 %v3345_v20  ;;  %1976 = vmatprep.subr.bf16.mxu1 %v3348_v25  ;;  %v696_v20 = vpop.f32.mrb[15].mxu1  ;;  %v3358_v25 = vld [vmem:[#allocation2 + $0x308] ss:$16 sps:$4 sm:$0xff]  }
 0x13d   : > { %v590_v56 = vadd.f32 %v589_v52, %v3803_v33  ;;  %v591_v58 = vpop.f32.mrb[18].mxu0  ;;  %1687 = vmatprep.mubr.bf16.mxu0 %v816_v42  ;;  %1913 = vmatprep.mubr.bf16.mxu1 %v816_v42  ;;  %v697_v26 = vadd.f32 %v696_v20, %v3819_v60 }
 0x13e   : > { %v592_v61 = vadd.f32 %v591_v58, %v3799_v32  ;;  %v593_v62 = vpop.f32.mrb[19].mxu0  ;;  %1688 = vmatmul.mubr.bf16.gmra.mrb[44].mxu0 %v815_v37  ;;  %1914 = vmatmul.mubr.bf16.gmra.mrb[44].mxu1 %v815_v37  ;;  %v771_v7 = vmax.f32 %v588_v51, 0.0  ;;  %v769_v37 = vmax.f32 %v695_v19, 0.0  ;;  %v3369_v51 = vld [vmem:[#allocation2 + $0x344] ss:$16 sps:$4 sm:$0xff]  }
 0x13f   : > { %v594_v2 = vadd.f32 %v593_v62, %v3803_v33  ;;  %1751 = vmatpush1.bf16.msra.mxu0 %v3343_v46  ;;  %1977 = vmatpush1.bf16.msra.mxu1 %v3346_v48  ;;  %v772_v12 = vmax.f32 %v590_v56, 0.0  ;;  %v770_v41 = vmax.f32 %v697_v26, 0.0  ;;  %v3361_v46 = vld [vmem:[#allocation2 + $0x320] ss:$16 sps:$4 sm:$0xff]   ;;  %v3372_v56 = vld [vmem:[#allocation2 + $0x34c] ss:$16 sps:$4 sm:$0xff]  }
 0x140   : > { %v775_v8 = vmax.f32 %v592_v61, 0.0  ;;  %1752 = vmatprep.subr.bf16.mxu0 %v3351_v53  ;;  %1978 = vmatprep.subr.bf16.mxu1 %v3354_v54  ;;  %v3866_v48 = vpack.c.bf16 %v769_v37, %v765_v18  ;;  %v700_v53 = vpop.f32.mrb[16].mxu1  ;;  %v3378_v18 = vld [vmem:[#allocation2 + $0x36c] ss:$16 sps:$4 sm:$0xff]  }
 0x141   : > { %v776_v13 = vmax.f32 %v594_v2, 0.0  ;;  %v3869_v52 = vpack.c.bf16 %v770_v41, %v766_v0  ;;  %v701_v58 = vadd.f32 %v700_v53, %v3814_v57  ;;  %v702_v59 = vpop.f32.mrb[17].mxu1  ;;  %v3373_v0 = vld [vmem:[#allocation2 + $0x360] ss:$16 sps:$4 sm:$0xff]   ;;  %v3384_v41 = vld [vmem:[#allocation2 + $0x38c] ss:$16 sps:$4 sm:$0xff]  }
 0x142   : > { %v819_v16 = vpack.c.bf16 %v775_v8, %v771_v7  ;;  %v704_v2 = vpop.f32.mrb[18].mxu1 }
 0x143   : > { %v820_v22 = vpack.c.bf16 %v776_v13, %v772_v12  ;;  %1753 = vmatpush1.bf16.msra.mxu0 %v3349_v63  ;;  %1979 = vmatpush1.bf16.msra.mxu1 %v3352_v3  ;;  %v597_v23 = vpop.f32.mrb[20].mxu0  ;;  %v703_v63 = vadd.f32 %v702_v59, %v3819_v60  ;;  %v705_v6 = vadd.f32 %v704_v2, %v3814_v57  ;;  %v706_v7 = vpop.f32.mrb[19].mxu1 }
 0x144   : > { %v598_v30 = vadd.f32 %v597_v23, %v3799_v32  ;;  %v599_v34 = vpop.f32.mrb[21].mxu0  ;;  %1754 = vmatprep.subr.bf16.mxu0 %v3357_v4  ;;  %1980 = vmatprep.subr.bf16.mxu1 %v3360_v9  ;;  %v773_v4 = vmax.f32 %v701_v58, 0.0  ;;  %v707_v13 = vadd.f32 %v706_v7, %v3819_v60  ;;  %v3390_v7 = vld [vmem:[#allocation2 + $0x3ac] ss:$16 sps:$4 sm:$0xff]  }
 0x145   : > { %v600_v38 = vadd.f32 %v599_v34, %v3803_v33  ;;  %v601_v39 = vpop.f32.mrb[22].mxu0  ;;  %1697 = vmatprep.mubr.bf16.mxu0 %v820_v22  ;;  %1923 = vmatprep.mubr.bf16.mxu1 %v820_v22  ;;  %v774_v12 = vmax.f32 %v703_v63, 0.0  ;;  %v777_v19 = vmax.f32 %v705_v6, 0.0  ;;  %v3376_v34 = vld [vmem:[#allocation2 + $0x368] ss:$16 sps:$4 sm:$0xff]   ;;  %v710_v37 = vpop.f32.mrb[20].mxu1 }
 0x146   : > { %v602_v42 = vadd.f32 %v601_v39, %v3799_v32  ;;  %v603_v43 = vpop.f32.mrb[23].mxu0  ;;  %1698 = vmatmul.mubr.bf16.gmra.mrb[48].mxu0 %v819_v16  ;;  %1924 = vmatmul.mubr.bf16.gmra.mrb[48].mxu1 %v819_v16  ;;  %v779_v54 = vmax.f32 %v598_v30, 0.0  ;;  %v3375_v16 = vld [vmem:[#allocation2 + $0x364] ss:$16 sps:$4 sm:$0xff]   ;;  %v778_v23 = vmax.f32 %v707_v13, 0.0 }
 0x147   : > { %v604_v49 = vadd.f32 %v603_v43, %v3803_v33  ;;  %1755 = vmatpush1.bf16.msra.mxu0 %v3355_v24  ;;  %1981 = vmatpush1.bf16.msra.mxu1 %v3358_v25  ;;  %v780_v61 = vmax.f32 %v600_v38, 0.0  ;;  %v3878_v26 = vpack.c.bf16 %v777_v19, %v773_v4  ;;  %v712_v43 = vpop.f32.mrb[21].mxu1  ;;  %v3387_v6 = vld [vmem:[#allocation2 + $0x3a4] ss:$16 sps:$4 sm:$0xff]  }
 0x148   : > { %v783_v55 = vmax.f32 %v602_v42, 0.0  ;;  %1756 = vmatprep.subr.bf16.mxu0 %v3363_v35  ;;  %1982 = vmatprep.subr.bf16.mxu1 %v3366_v36  ;;  %v3381_v35 = vld [vmem:[#allocation2 + $0x384] ss:$16 sps:$4 sm:$0xff]   ;;  %v3881_v36 = vpack.c.bf16 %v778_v23, %v774_v12  ;;  %v711_v42 = vadd.f32 %v710_v37, %v3814_v57 }
 0x149   : > { %v784_v62 = vmax.f32 %v604_v49, 0.0  ;;  %v3393_v19 = vld [vmem:[#allocation2 + $0x3c4] ss:$16 sps:$4 sm:$0xff]  }
 0x14a   : > { %v823_v3 = vpack.c.bf16 %v783_v55, %v779_v54  ;;  %v781_v54 = vmax.f32 %v711_v42, 0.0 }
 0x14b   : > { %v824_v8 = vpack.c.bf16 %v784_v62, %v780_v61  ;;  %1757 = vmatpush1.bf16.msra.mxu0 %v3361_v46  ;;  %1983 = vmatpush1.bf16.msra.mxu1 %v3364_v50  ;;  %v607_v9 = vpop.f32.mrb[24].mxu0  ;;  %v713_v50 = vadd.f32 %v712_v43, %v3819_v60  ;;  %v3379_v61 = vld [vmem:[#allocation2 + $0x380] ss:$16 sps:$4 sm:$0xff]   ;;  %v3382_v62 = vld [vmem:[#allocation2 + $0x388] ss:$16 sps:$4 sm:$0xff]  }
 0x14c   : > { %v608_v14 = vadd.f32 %v607_v9, %v3799_v32  ;;  %v609_v15 = vpop.f32.mrb[25].mxu0  ;;  %1758 = vmatprep.subr.bf16.mxu0 %v3369_v51  ;;  %1984 = vmatprep.subr.bf16.mxu1 %v3372_v56  ;;  %v714_v51 = vpop.f32.mrb[22].mxu1  ;;  %v3391_v43 = vld [vmem:[#allocation2 + $0x3c0] ss:$16 sps:$4 sm:$0xff]  }
 0x14d   : > { %v610_v20 = vadd.f32 %v609_v15, %v3803_v33  ;;  %v611_v22 = vpop.f32.mrb[26].mxu0  ;;  %1707 = vmatprep.mubr.bf16.mxu0 %v824_v8  ;;  %1933 = vmatprep.mubr.bf16.mxu1 %v824_v8  ;;  %v715_v55 = vadd.f32 %v714_v51, %v3814_v57  ;;  %v716_v56 = vpop.f32.mrb[23].mxu1  ;;  %v782_v63 = vmax.f32 %v713_v50, 0.0  ;;  %v3399_v51 = vld [vmem:[#allocation2 + $0x3e4] ss:$16 sps:$4 sm:$0xff]  }
 0x14e   : > { %v612_v24 = vadd.f32 %v611_v22, %v3799_v32  ;;  %v613_v25 = vpop.f32.mrb[27].mxu0  ;;  %1708 = vmatmul.mubr.bf16.gmra.mrb[52].mxu0 %v823_v3  ;;  %1934 = vmatmul.mubr.bf16.gmra.mrb[52].mxu1 %v823_v3  ;;  %v787_v38 = vmax.f32 %v608_v14, 0.0  ;;  %v717_v2 = vadd.f32 %v716_v56, %v3819_v60  ;;  %v3385_v14 = vld [vmem:[#allocation2 + $0x3a0] ss:$16 sps:$4 sm:$0xff]   ;;  %v720_v22 = vpop.f32.mrb[24].mxu1 }
 0x14f   : > { %v614_v30 = vadd.f32 %v613_v25, %v3803_v33  ;;  %1759 = vmatpush1.bf16.msra.mxu0 %v3367_v10  ;;  %1985 = vmatpush1.bf16.msra.mxu1 %v3370_v11  ;;  %v788_v46 = vmax.f32 %v610_v20, 0.0  ;;  %v785_v8 = vmax.f32 %v715_v55, 0.0  ;;  %v721_v25 = vadd.f32 %v720_v22, %v3814_v57 }
 0x150   : > { %v791_v39 = vmax.f32 %v612_v24, 0.0  ;;  %1760 = vmatprep.subr.bf16.mxu0 %v3375_v16  ;;  %1986 = vmatprep.subr.bf16.mxu1 %v3378_v18  ;;  %v786_v11 = vmax.f32 %v717_v2, 0.0  ;;  %v3388_v18 = vld [vmem:[#allocation2 + $0x3a8] ss:$16 sps:$4 sm:$0xff]   ;;  %v2149_v22 = vadd.s32 56, %v3790_v28 }
 0x151   : > { %v792_v49 = vmax.f32 %v614_v30, 0.0  ;;  %v3890_v15 = vpack.c.bf16 %v785_v8, %v781_v54 }
 0x152   : > { %v827_v53 = vpack.c.bf16 %v791_v39, %v787_v38  ;;  %v3893_v20 = vpack.c.bf16 %v786_v11, %v782_v63  ;;  %v789_v38 = vmax.f32 %v721_v25, 0.0  ;;  %v2155_v25 = vadd.s32 104, %v3790_v28 }
 0x153   : > { %v828_v58 = vpack.c.bf16 %v792_v49, %v788_v46  ;;  %1761 = vmatpush1.bf16.msra.mxu0 %v3373_v0  ;;  %1987 = vmatpush1.bf16.msra.mxu1 %v3376_v34  ;;  %v617_v59 = vpop.f32.mrb[28].mxu0  ;;  %v722_v0 = vpop.f32.mrb[25].mxu1  ;;  %v3394_v46 = vld [vmem:[#allocation2 + $0x3c8] ss:$16 sps:$4 sm:$0xff]  }
 0x154   : > { %v618_v3 = vadd.f32 %v617_v59, %v3799_v32  ;;  %v619_v4 = vpop.f32.mrb[29].mxu0  ;;  %1762 = vmatprep.subr.bf16.mxu0 %v3381_v35  ;;  %1988 = vmatprep.subr.bf16.mxu1 %v3384_v41  ;;  %v723_v35 = vadd.f32 %v722_v0, %v3819_v60  ;;  %v3400_v59 = vld [vmem:[#allocation2 + $0x3e8] ss:$16 sps:$4 sm:$0xff]   ;;  %v2156_v0 = vadd.s32 112, %v3790_v28 }
 0x155   : > { %v620_v9 = vadd.f32 %v619_v4, %v3803_v33  ;;  %v621_v10 = vpop.f32.mrb[30].mxu0  ;;  %1717 = vmatprep.mubr.bf16.mxu0 %v828_v58  ;;  %1943 = vmatprep.mubr.bf16.mxu1 %v828_v58  ;;  %v3397_v58 = vld [vmem:[#allocation2 + $0x3e0] ss:$16 sps:$4 sm:$0xff]  }
 0x156   : > { %v622_v12 = vadd.f32 %v621_v10, %v3799_v32  ;;  %v623_v13 = vpop.f32.mrb[31].mxu0  ;;  %1718 = vmatmul.mubr.bf16.gmra.mrb[56].mxu0 %v827_v53  ;;  %1944 = vmatmul.mubr.bf16.gmra.mrb[56].mxu1 %v827_v53  ;;  %v795_v23 = vmax.f32 %v618_v3, 0.0  ;;  %v3396_v32 = vld [vmem:[#allocation2 + $0x3cc] ss:$16 sps:$4 sm:$0xff]   ;;  %v790_v49 = vmax.f32 %v723_v35, 0.0 }
 0x157   : > { %v624_v16 = vadd.f32 %v623_v13, %v3803_v33  ;;  %1763 = vmatpush1.bf16.msra.mxu0 %v3379_v61  ;;  %1989 = vmatpush1.bf16.msra.mxu1 %v3382_v62  ;;  %v796_v30 = vmax.f32 %v620_v9, 0.0  ;;  %v724_v33 = vpop.f32.mrb[26].mxu1  ;;  %v3402_v53 = vld [vmem:[#allocation2 + $0x3ec] ss:$16 sps:$4 sm:$0xff]  }
 0x158   : > { %v799_v24 = vmax.f32 %v622_v12, 0.0  ;;  %1764 = vmatprep.subr.bf16.mxu0 %v3387_v6  ;;  %1990 = vmatprep.subr.bf16.mxu1 %v3390_v7  ;;  %v725_v39 = vadd.f32 %v724_v33, %v3814_v57  ;;  %v726_v41 = vpop.f32.mrb[27].mxu1 }
 0x159   : > { %v800_v34 = vmax.f32 %v624_v16, 0.0  ;;  %v727_v50 = vadd.f32 %v726_v41, %v3819_v60  ;;  %v730_v62 = vpop.f32.mrb[28].mxu1 }
 0x15a   : > { %v831_v37 = vpack.c.bf16 %v799_v24, %v795_v23  ;;  %v793_v54 = vmax.f32 %v725_v39, 0.0  ;;  %v731_v63 = vadd.f32 %v730_v62, %v3814_v57  ;;  %v732_v2 = vpop.f32.mrb[29].mxu1  ;;  %v2151_v23 = vadd.s32 72, %v3790_v28 }
 0x15b   : > { %v832_v42 = vpack.c.bf16 %v800_v34, %v796_v30  ;;  %1765 = vmatpush1.bf16.msra.mxu0 %v3385_v14  ;;  %1991 = vmatpush1.bf16.msra.mxu1 %v3388_v18  ;;  %v794_v55 = vmax.f32 %v727_v50, 0.0  ;;  %v733_v3 = vadd.f32 %v732_v2, %v3819_v60  ;;  %v734_v4 = vpop.f32.mrb[30].mxu1  ;;  %v2152_v24 = vadd.s32 80, %v3790_v28 }
 0x15c   : > { %1766 = vmatprep.subr.bf16.mxu0 %v3393_v19  ;;  %1992 = vmatprep.subr.bf16.mxu1 %v3396_v32  ;;  %v829_v56 = vpack.c.bf16 %v793_v54, %v789_v38  ;;  %v797_v6 = vmax.f32 %v731_v63, 0.0  ;;  %v735_v7 = vadd.f32 %v734_v4, %v3814_v57  ;;  %v736_v8 = vpop.f32.mrb[31].mxu1  ;;  %v2159_v57 = vstv %s2951_s16  ;;  %s3565_s16 = smov [#allocation5]  }
 0x15d   : > { %1727 = vmatprep.mubr.bf16.mxu0 %v832_v42  ;;  %1953 = vmatprep.mubr.bf16.mxu1 %v832_v42  ;;  %v830_v61 = vpack.c.bf16 %v794_v55, %v790_v49  ;;  %v798_v9 = vmax.f32 %v733_v3, 0.0  ;;  %v737_v10 = vadd.f32 %v736_v8, %v3819_v60  ;;  %v2160_v60 = vadd.s32 %v2159_v57, %v3790_v28  ;;  %s3435_s19 = sshll.u32 %s3565_s16, 4  ;;  %s3436_s19 = int_to_ptr.vmem [resolvable:$false] %s3435_s19 }
 0x15e   : > { %1728 = vmatmul.mubr.bf16.gmra.mrb[60].mxu0 %v831_v37  ;;  %1954 = vmatmul.mubr.bf16.gmra.mrb[60].mxu1 %v831_v37  ;;  %v801_v11 = vmax.f32 %v735_v7, 0.0  ;;  %v2147_v19 = vadd.s32 40, %v3790_v28  ;;  %v2153_v32 = vadd.s32 88, %v3790_v28  ;;  %v2157_v34 = vadd.s32 120, %v3790_v28  ;;  %s3437_s13 = scalar_lea.vmem %s3436_s19, 16384  ;;  %p3438_p2 = scmp.lt.s32.totalorder %s4258_s9, %s3436_s19 }
 0x15f   : > { %1767 = vmatpush1.bf16.msra.mxu0 %v3391_v43  ;;  %1993 = vmatpush1.bf16.msra.mxu1 %v3394_v46  ;;  %v802_v12 = vmax.f32 %v737_v10, 0.0  ;;  %vm2176_vm1 = vcmp.lt.s32.totalorder %v2160_v60, 200  ;;  %v2167_v33 = vadd.s32 %v2159_v57, %v2149_v22  ;;  %v2169_v38 = vadd.s32 %v2159_v57, %v2151_v23  ;;  %p3439_p3 = scmp.lt.s32.totalorder %s3437_s13, %s3431_s18 }
 0x160   : > { %1768 = vmatprep.subr.bf16.mxu0 %v3399_v51  ;;  %1994 = vmatprep.subr.bf16.mxu1 %v3402_v53  ;;  %v833_v13 = vpack.c.bf16 %v801_v11, %v797_v6  ;;  %v2165_v30 = vadd.s32 %v2159_v57, %v2147_v19  ;;  %v2170_v39 = vadd.s32 %v2159_v57, %v2152_v24  ;;  %v3564_v50 = vmov 1966171168  }
 0x161   : > { %1770 = vmatprep.mubr.bf16.mxu0 %v3833_v45  ;;  %1996 = vmatprep.mubr.bf16.mxu1 %v3833_v45  ;;  %v834_v45 = vpack.c.bf16 %v802_v12, %v798_v9  ;;  %v2171_v41 = vadd.s32 %v2159_v57, %v2153_v32  ;;  %v2173_v46 = vadd.s32 %v2159_v57, %v2155_v25  ;;  %v2379_v51 = vunpack.c.l.s4 %v3564_v50  ;;  %p3440_p4 = por %p3439_p3, %p3438_p2 }
 0x162   : > { %v2174_v49 = vadd.s32 %v2159_v57, %v2156_v0  ;;  %vm2181_vm6 = vcmp.lt.s32.totalorder %v2165_v30, 200  ;;  %v2175_v55 = vadd.s32 %v2159_v57, %v2157_v34  ;;  %vm2183_vm8 = vcmp.lt.s32.totalorder %v2167_v33, 200 }
 0x163   : > { %1769 = vmatpush1.bf16.msra.mxu0 %v3397_v58  ;;  %1995 = vmatpush1.bf16.msra.mxu1 %v3400_v59  ;;  %vm2185_vm10 = vcmp.lt.s32.totalorder %v2169_v38, 200  ;;  %vm2186_vm11 = vcmp.lt.s32.totalorder %v2170_v39, 200  ;;  %vm2187_vm12 = vcmp.lt.s32.totalorder %v2171_v41, 200  ;;  %vm2189_vm14 = vcmp.lt.s32.totalorder %v2173_v46, 200  ;;  %p3441_p7 = pnand %p3440_p4, %p3434_p12 }
 0x164   : > { %vm2190_vm15 = vcmp.lt.s32.totalorder %v2174_v49, 200  ;;  %v2380_v59 = vunpack.c.0.s8 %v2379_v51  ;;  %vm2191_vm0 = vcmp.lt.s32.totalorder %v2175_v55, 200 }
 0x166   : > { %1771 = vmatmul.mubr.bf16.vlgmr.msra.gmra.mrb[32].mxu0 %v3830_v40  ;;  %1997 = vmatmul.mubr.bf16.vlgmr.msra.gmra.mrb[32].mxu1 %v3830_v40  ;;  %v963_v40 = vld [vmem:[%s4407_s4] sm:$0xf] }
 0x167   : > { %1780 = vmatprep.mubr.bf16.mxu0 %v3845_v21  ;;  %2006 = vmatprep.mubr.bf16.mxu1 %v3845_v21  ;;  %v2144_v21 = vadd.s32 16, %v3790_v28  ;;  %v3953_v18 = vrot.slane %v963_v40, %v362_v47  ;;  %v2154_v47 = vadd.s32 96, %v3790_v28 }
 0x169   : > { %v2162_v14 = vadd.s32 %v2159_v57, %v2144_v21  ;;  %v2172_v42 = vadd.s32 %v2159_v57, %v2154_v47 }
 0x16b   : > { %vm2178_vm3 = vcmp.lt.s32.totalorder %v2162_v14, 200  ;;  %vm2188_vm13 = vcmp.lt.s32.totalorder %v2172_v42, 200 }
 0x16e   : > { %1781 = vmatmul.mubr.bf16.gmra.mrb[36].mxu0 %v3842_v17  ;;  %2007 = vmatmul.mubr.bf16.gmra.mrb[36].mxu1 %v3842_v17  ;;  %v2143_v17 = vadd.s32 8, %v3790_v28 }
 0x16f   : > { %1790 = vmatprep.mubr.bf16.mxu0 %v3857_v5  ;;  %2016 = vmatprep.mubr.bf16.mxu1 %v3857_v5  ;;  %v2146_v5 = vadd.s32 32, %v3790_v28 }
 0x176   : > { %1791 = vmatmul.mubr.bf16.gmra.mrb[40].mxu0 %v3854_v1  ;;  %2017 = vmatmul.mubr.bf16.gmra.mrb[40].mxu1 %v3854_v1  ;;  %v2145_v1 = vadd.s32 24, %v3790_v28 }
 0x177   : > { %1800 = vmatprep.mubr.bf16.mxu0 %v3869_v52  ;;  %2026 = vmatprep.mubr.bf16.mxu1 %v3869_v52  ;;  %v3942_v52 = vrot.slane %v963_v40, %v358_v44  ;;  %v2148_v44 = vadd.s32 48, %v3790_v28 }
 0x179   : > { %v2166_v35 = vadd.s32 %v2159_v57, %v2148_v44 }
 0x17b   : > { %vm2182_vm7 = vcmp.lt.s32.totalorder %v2166_v35, 200 }
 0x17e   : > { %1801 = vmatmul.mubr.bf16.gmra.mrb[44].mxu0 %v3866_v48  ;;  %2027 = vmatmul.mubr.bf16.gmra.mrb[44].mxu1 %v3866_v48  ;;  %v3938_v48 = vrot.slane %v963_v40, %v350_v29  ;;  %v2163_v29 = vadd.s32 %v2159_v57, %v2145_v1  ;;  %v4027_v1 = vsub.s32 %v2380_v59, %v3790_v28 }
 0x17f   : > { %1810 = vmatprep.mubr.bf16.mxu0 %v3881_v36  ;;  %2036 = vmatprep.mubr.bf16.mxu1 %v3881_v36  ;;  %v2161_v36 = vadd.s32 %v2159_v57, %v2143_v17 }
 0x180   : > { %vm2179_vm4 = vcmp.lt.s32.totalorder %v2163_v29, 200 }
 0x181   : > { %vm2177_vm2 = vcmp.lt.s32.totalorder %v2161_v36, 200 }
 0x186   : > { %1811 = vmatmul.mubr.bf16.gmra.mrb[48].mxu0 %v3878_v26  ;;  %2037 = vmatmul.mubr.bf16.gmra.mrb[48].mxu1 %v3878_v26  ;;  %v3946_v26 = vrot.slane %v963_v40, %v354_v31  ;;  %v2150_v31 = vadd.s32 64, %v3790_v28 }
 0x187   : > { %1820 = vmatprep.mubr.bf16.mxu0 %v3893_v20  ;;  %2046 = vmatprep.mubr.bf16.mxu1 %v3893_v20  ;;  %v2164_v20 = vadd.s32 %v2159_v57, %v2146_v5 }
 0x188   : > { %v2168_v37 = vadd.s32 %v2159_v57, %v2150_v31 }
 0x189   : > { %vm2180_vm5 = vcmp.lt.s32.totalorder %v2164_v20, 200 }
 0x18a   : > { %vm2184_vm9 = vcmp.lt.s32.totalorder %v2168_v37, 200 }
 0x18e   : > { %1821 = vmatmul.mubr.bf16.gmra.mrb[52].mxu0 %v3890_v15  ;;  %2047 = vmatmul.mubr.bf16.gmra.mrb[52].mxu1 %v3890_v15  ;;  %v3563_v15 = vmov 0.0  }
 0x18f   : > { %1830 = vmatprep.mubr.bf16.mxu0 %v830_v61  ;;  %2056 = vmatprep.mubr.bf16.mxu1 %v830_v61  ;;  %v3949_v16 = vsel %vm2176_vm1, 1.0, %v3563_v15  ;;  %v3971_v43 = vsel %vm2177_vm2, 1.0, %v3563_v15  ;;  %v3975_v53 = vsel %vm2178_vm3, 1.0, %v3563_v15  ;;  %v3979_v54 = vsel %vm2179_vm4, 1.0, %v3563_v15 }
 0x190   : > { %v3987_v58 = vsel %vm2181_vm6, 1.0, %v3563_v15  ;;  %v3990_v61 = vsel %vm2182_vm7, 1.0, %v3563_v15  ;;  %v3993_v62 = vsel %vm2183_vm8, 1.0, %v3563_v15  ;;  %v3996_v63 = vsel %vm2184_vm9, 1.0, %v3563_v15 }
 0x191   : > { %v3999_v4 = vsel %vm2185_vm10, 1.0, %v3563_v15  ;;  %v4002_v6 = vsel %vm2186_vm11, 1.0, %v3563_v15  ;;  %v4005_v7 = vsel %vm2187_vm12, 1.0, %v3563_v15  ;;  %v4008_v8 = vsel %vm2188_vm13, 1.0, %v3563_v15 }
 0x192   : > { %v4024_v21 = vsel %vm2191_vm0, 1.0, %v3563_v15 }
 0x196   : > { %1831 = vmatmul.mubr.bf16.gmra.mrb[56].mxu0 %v829_v56  ;;  %2057 = vmatmul.mubr.bf16.gmra.mrb[56].mxu1 %v829_v56  ;;  %v3984_v56 = vsel %vm2180_vm5, 1.0, %v3563_v15 }
 0x197   : > { %1840 = vmatprep.mubr.bf16.mxu0 %v834_v45  ;;  %2066 = vmatprep.mubr.bf16.mxu1 %v834_v45  ;;  %v4018_v45 = vsel %vm2190_vm15, 1.0, %v3563_v15 }
 0x19e   : > { %1841 = vmatmul.mubr.bf16.gmra.mrb[60].mxu0 %v833_v13  ;;  %2067 = vmatmul.mubr.bf16.gmra.mrb[60].mxu1 %v833_v13  ;;  %v4014_v13 = vsel %vm2189_vm14, 1.0, %v3563_v15 }
 0x239   : > { %v1772_v2 = vpop.f32.mrb[32].mxu0  ;;  %v1998_v3 = vpop.f32.mrb[32].mxu1 }
 0x23a   : > { %v2984_v9 = vadd.f32 %v1772_v2, %v3938_v48  ;;  %v3016_v10 = vadd.f32 %v1998_v3, %v3942_v52  ;;  %v1774_v11 = vpop.f32.mrb[33].mxu0  ;;  %v2000_v12 = vpop.f32.mrb[33].mxu1 }
 0x23b   : > { %v2985_v57 = vadd.f32 %v1774_v11, %v3946_v26  ;;  %v3017_v60 = vadd.f32 %v2000_v12, %v3953_v18  ;;  %v1776_v40 = vpop.f32.mrb[34].mxu0  ;;  %v2002_v17 = vpop.f32.mrb[34].mxu1 }
 0x23c   : > { %2077 = vst [vmem:[%s4031_s23] sm:$0xff] %v2984_v9  ;;  %v2224_v5 = vmul.f32 %v2984_v9, %v3949_v16  ;;  %2079 = vst [vmem:[%s4031_s23 + $0x10] sm:$0xff] %v3016_v10  ;;  %v2226_v36 = vmul.f32 %v3016_v10, %v3949_v16  ;;  %v2986_v14 = vadd.f32 %v1776_v40, %v3938_v48  ;;  %v1778_v15 = vpop.f32.mrb[35].mxu0  ;;  %v2004_v29 = vpop.f32.mrb[35].mxu1 }
 0x23d   : > { %v3018_v28 = vadd.f32 %v2002_v17, %v3942_v52  ;;  %2078 = vst [vmem:[%s4031_s23 + $0x8] sm:$0xff] %v2985_v57  ;;  %v2225_v19 = vmul.f32 %v2985_v57, %v3949_v16  ;;  %2080 = vst [vmem:[%s4031_s23 + $0x18] sm:$0xff] %v3017_v60  ;;  %v2227_v20 = vmul.f32 %v3017_v60, %v3949_v16 }
 0x23e   : > { %v2987_v44 = vadd.f32 %v1778_v15, %v3946_v26  ;;  %v3019_v22 = vadd.f32 %v2004_v29, %v3953_v18  ;;  %v2406_v31 = vmul.f32 %v2224_v5, %v2224_v5  ;;  %v2408_v23 = vmul.f32 %v2226_v36, %v2226_v36  ;;  %2081 = vst [vmem:[%s4031_s23 + $0x20] sm:$0xff] %v2986_v14 }
 0x23f   : > { %v2228_v24 = vmul.f32 %v2986_v14, %v3971_v43  ;;  %2083 = vst [vmem:[%s4031_s23 + $0x30] sm:$0xff] %v3018_v28  ;;  %v2230_v32 = vmul.f32 %v3018_v28, %v3971_v43  ;;  %v2407_v47 = vmul.f32 %v2225_v19, %v2225_v19  ;;  %v2409_v25 = vmul.f32 %v2227_v20, %v2227_v20 }
 0x240   : > { %2082 = vst [vmem:[%s4031_s23 + $0x28] sm:$0xff] %v2987_v44  ;;  %v2229_v0 = vmul.f32 %v2987_v44, %v3971_v43  ;;  %2084 = vst [vmem:[%s4031_s23 + $0x38] sm:$0xff] %v3019_v22  ;;  %v2231_v16 = vmul.f32 %v3019_v22, %v3971_v43 }
 0x241   : > { %v2288_v30 = vadd.f32 %v2228_v24, %v2224_v5  ;;  %v2410_v34 = vmul.f32 %v2228_v24, %v2228_v24  ;;  %v2330_v35 = vadd.f32 %v2230_v32, %v2226_v36  ;;  %v2412_v33 = vmul.f32 %v2230_v32, %v2230_v32  ;;  %v1782_v42 = vpop.f32.mrb[36].mxu0  ;;  %v2008_v46 = vpop.f32.mrb[36].mxu1 }
 0x242   : > { %v2309_v37 = vadd.f32 %v2229_v0, %v2225_v19  ;;  %v2411_v38 = vmul.f32 %v2229_v0, %v2229_v0  ;;  %v2351_v39 = vadd.f32 %v2231_v16, %v2227_v20  ;;  %v2413_v41 = vmul.f32 %v2231_v16, %v2231_v16  ;;  %v1784_v59 = vpop.f32.mrb[37].mxu0  ;;  %v2010_v43 = vpop.f32.mrb[37].mxu1 }
 0x243   : > { %v2470_v49 = vadd.f32 %v2410_v34, %v2406_v31  ;;  %v2512_v50 = vadd.f32 %v2412_v33, %v2408_v23  ;;  %v2988_v51 = vadd.f32 %v1782_v42, %v3938_v48  ;;  %v3020_v55 = vadd.f32 %v2008_v46, %v3942_v52  ;;  %v1786_v11 = vpop.f32.mrb[38].mxu0  ;;  %v2012_v12 = vpop.f32.mrb[38].mxu1 }
 0x244   : > { %v2491_v2 = vadd.f32 %v2411_v38, %v2407_v47  ;;  %v2533_v3 = vadd.f32 %v2413_v41, %v2409_v25  ;;  %v2989_v9 = vadd.f32 %v1784_v59, %v3946_v26  ;;  %v3021_v10 = vadd.f32 %v2010_v43, %v3953_v18  ;;  %v1788_v5 = vpop.f32.mrb[39].mxu0  ;;  %v2014_v36 = vpop.f32.mrb[39].mxu1 }
 0x245   : > { %2085 = vst [vmem:[%s4031_s23 + $0x40] sm:$0xff] %v2988_v51  ;;  %v2232_v57 = vmul.f32 %v2988_v51, %v3975_v53  ;;  %2087 = vst [vmem:[%s4031_s23 + $0x50] sm:$0xff] %v3020_v55  ;;  %v2234_v60 = vmul.f32 %v3020_v55, %v3975_v53  ;;  %v2990_v40 = vadd.f32 %v1786_v11, %v3938_v48 }
 0x246   : > { %v3022_v17 = vadd.f32 %v2012_v12, %v3942_v52  ;;  %2086 = vst [vmem:[%s4031_s23 + $0x48] sm:$0xff] %v2989_v9  ;;  %v2233_v14 = vmul.f32 %v2989_v9, %v3975_v53  ;;  %2088 = vst [vmem:[%s4031_s23 + $0x58] sm:$0xff] %v3021_v10  ;;  %v2235_v28 = vmul.f32 %v3021_v10, %v3975_v53 }
 0x247   : > { %v2991_v15 = vadd.f32 %v1788_v5, %v3946_v26  ;;  %v3023_v29 = vadd.f32 %v2014_v36, %v3953_v18  ;;  %v2289_v19 = vadd.f32 %v2288_v30, %v2232_v57  ;;  %v2414_v20 = vmul.f32 %v2232_v57, %v2232_v57  ;;  %2089 = vst [vmem:[%s4031_s23 + $0x60] sm:$0xff] %v2990_v40 }
 0x248   : > { %v2331_v44 = vadd.f32 %v2330_v35, %v2234_v60  ;;  %v2416_v22 = vmul.f32 %v2234_v60, %v2234_v60  ;;  %2091 = vst [vmem:[%s4031_s23 + $0x70] sm:$0xff] %v3022_v17  ;;  %v2310_v31 = vadd.f32 %v2309_v37, %v2233_v14  ;;  %v2415_v23 = vmul.f32 %v2233_v14, %v2233_v14 }
 0x249   : > { %v2352_v24 = vadd.f32 %v2351_v39, %v2235_v28  ;;  %v2417_v32 = vmul.f32 %v2235_v28, %v2235_v28  ;;  %2090 = vst [vmem:[%s4031_s23 + $0x68] sm:$0xff] %v2991_v15  ;;  %2092 = vst [vmem:[%s4031_s23 + $0x78] sm:$0xff] %v3023_v29  ;;  %v2471_v47 = vadd.f32 %v2470_v49, %v2414_v20  ;;  %v1792_v33 = vpop.f32.mrb[40].mxu0  ;;  %v2018_v38 = vpop.f32.mrb[40].mxu1 }
 0x24a   : > { %v2513_v25 = vadd.f32 %v2512_v50, %v2416_v22  ;;  %v2236_v53 = vmul.f32 %v2990_v40, %v3979_v54  ;;  %v2238_v0 = vmul.f32 %v3022_v17, %v3979_v54  ;;  %v2492_v16 = vadd.f32 %v2491_v2, %v2415_v23  ;;  %v1794_v46 = vpop.f32.mrb[41].mxu0  ;;  %v2020_v51 = vpop.f32.mrb[41].mxu1 }
 0x24b   : > { %v2534_v34 = vadd.f32 %v2533_v3, %v2417_v32  ;;  %v2237_v30 = vmul.f32 %v2991_v15, %v3979_v54  ;;  %v2239_v35 = vmul.f32 %v3023_v29, %v3979_v54  ;;  %v1796_v43 = vpop.f32.mrb[42].mxu0  ;;  %v2022_v2 = vpop.f32.mrb[42].mxu1  ;;  %v2992_v54 = vadd.f32 %v1792_v33, %v3938_v48 }
 0x24c   : > { %v2290_v37 = vadd.f32 %v2289_v19, %v2236_v53  ;;  %v2418_v41 = vmul.f32 %v2236_v53, %v2236_v53  ;;  %v2332_v39 = vadd.f32 %v2331_v44, %v2238_v0  ;;  %v2420_v42 = vmul.f32 %v2238_v0, %v2238_v0  ;;  %v1798_v11 = vpop.f32.mrb[43].mxu0  ;;  %v2024_v12 = vpop.f32.mrb[43].mxu1 }
 0x24d   : > { %v2311_v49 = vadd.f32 %v2310_v31, %v2237_v30  ;;  %v2419_v50 = vmul.f32 %v2237_v30, %v2237_v30  ;;  %v2353_v55 = vadd.f32 %v2352_v24, %v2239_v35  ;;  %v2421_v59 = vmul.f32 %v2239_v35, %v2239_v35  ;;  %2093 = vst [vmem:[%s4031_s23 + $0x80] sm:$0xff] %v2992_v54 }
 0x24e   : > { %v2472_v3 = vadd.f32 %v2471_v47, %v2418_v41  ;;  %v2514_v9 = vadd.f32 %v2513_v25, %v2420_v42  ;;  %v3024_v10 = vadd.f32 %v2018_v38, %v3942_v52  ;;  %v2993_v40 = vadd.f32 %v1794_v46, %v3946_v26 }
 0x24f   : > { %v2493_v57 = vadd.f32 %v2492_v16, %v2419_v50  ;;  %v2535_v60 = vadd.f32 %v2534_v34, %v2421_v59  ;;  %v3025_v17 = vadd.f32 %v2020_v51, %v3953_v18  ;;  %v2240_v5 = vmul.f32 %v2992_v54, %v3984_v56 }
 0x250   : > { %2095 = vst [vmem:[%s4031_s23 + $0x90] sm:$0xff] %v3024_v10  ;;  %v2242_v36 = vmul.f32 %v3024_v10, %v3984_v56  ;;  %v2994_v14 = vadd.f32 %v1796_v43, %v3938_v48  ;;  %v3026_v28 = vadd.f32 %v2022_v2, %v3942_v52  ;;  %2094 = vst [vmem:[%s4031_s23 + $0x88] sm:$0xff] %v2993_v40 }
 0x251   : > { %v2241_v15 = vmul.f32 %v2993_v40, %v3984_v56  ;;  %2096 = vst [vmem:[%s4031_s23 + $0x98] sm:$0xff] %v3025_v17  ;;  %v2243_v29 = vmul.f32 %v3025_v17, %v3984_v56  ;;  %v2995_v19 = vadd.f32 %v1798_v11, %v3946_v26  ;;  %v3027_v20 = vadd.f32 %v2024_v12, %v3953_v18  ;;  %v1802_v53 = vpop.f32.mrb[44].mxu0  ;;  %v2028_v0 = vpop.f32.mrb[44].mxu1 }
 0x252   : > { %v2291_v44 = vadd.f32 %v2290_v37, %v2240_v5  ;;  %v2422_v22 = vmul.f32 %v2240_v5, %v2240_v5  ;;  %v2333_v31 = vadd.f32 %v2332_v39, %v2242_v36  ;;  %v2424_v23 = vmul.f32 %v2242_v36, %v2242_v36  ;;  %2097 = vst [vmem:[%s4031_s23 + $0xa0] sm:$0xff] %v2994_v14  ;;  %v1804_v35 = vpop.f32.mrb[45].mxu0  ;;  %v2030_v33 = vpop.f32.mrb[45].mxu1 }
 0x253   : > { %2099 = vst [vmem:[%s4031_s23 + $0xb0] sm:$0xff] %v3026_v28  ;;  %v2312_v24 = vadd.f32 %v2311_v49, %v2241_v15  ;;  %v2423_v32 = vmul.f32 %v2241_v15, %v2241_v15  ;;  %v2354_v47 = vadd.f32 %v2353_v55, %v2243_v29  ;;  %v2425_v25 = vmul.f32 %v2243_v29, %v2243_v29  ;;  %v1806_v42 = vpop.f32.mrb[46].mxu0  ;;  %v2032_v46 = vpop.f32.mrb[46].mxu1 }
 0x254   : > { %2098 = vst [vmem:[%s4031_s23 + $0xa8] sm:$0xff] %v2995_v19  ;;  %2100 = vst [vmem:[%s4031_s23 + $0xb8] sm:$0xff] %v3027_v20  ;;  %v2473_v16 = vadd.f32 %v2472_v3, %v2422_v22  ;;  %v2515_v56 = vadd.f32 %v2514_v9, %v2424_v23  ;;  %v2244_v34 = vmul.f32 %v2994_v14, %v3987_v58  ;;  %v1808_v59 = vpop.f32.mrb[47].mxu0  ;;  %v2034_v43 = vpop.f32.mrb[47].mxu1 }
 0x255   : > { %v2246_v30 = vmul.f32 %v3026_v28, %v3987_v58  ;;  %v2494_v38 = vadd.f32 %v2493_v57, %v2423_v32  ;;  %v2536_v37 = vadd.f32 %v2535_v60, %v2425_v25  ;;  %v2245_v41 = vmul.f32 %v2995_v19, %v3987_v58 }
 0x256   : > { %v2247_v39 = vmul.f32 %v3027_v20, %v3987_v58  ;;  %v2292_v51 = vadd.f32 %v2291_v44, %v2244_v34  ;;  %v2426_v49 = vmul.f32 %v2244_v34, %v2244_v34  ;;  %v2996_v58 = vadd.f32 %v1802_v53, %v3938_v48 }
 0x257   : > { %v2334_v50 = vadd.f32 %v2333_v31, %v2246_v30  ;;  %v2428_v55 = vmul.f32 %v2246_v30, %v2246_v30  ;;  %v2313_v2 = vadd.f32 %v2312_v24, %v2245_v41  ;;  %v2427_v3 = vmul.f32 %v2245_v41, %v2245_v41 }
 0x258   : > { %v2355_v9 = vadd.f32 %v2354_v47, %v2247_v39  ;;  %v2429_v54 = vmul.f32 %v2247_v39, %v2247_v39  ;;  %v2474_v10 = vadd.f32 %v2473_v16, %v2426_v49  ;;  %v3028_v12 = vadd.f32 %v2028_v0, %v3942_v52  ;;  %2101 = vst [vmem:[%s4031_s23 + $0xc0] sm:$0xff] %v2996_v58 }
 0x259   : > { %v2516_v11 = vadd.f32 %v2515_v56, %v2428_v55  ;;  %v2495_v57 = vadd.f32 %v2494_v38, %v2427_v3  ;;  %v2997_v40 = vadd.f32 %v1804_v35, %v3946_v26  ;;  %v3029_v17 = vadd.f32 %v2030_v33, %v3953_v18  ;;  %v1812_v44 = vpop.f32.mrb[48].mxu0  ;;  %v2038_v22 = vpop.f32.mrb[48].mxu1 }
 0x25a   : > { %v2537_v60 = vadd.f32 %v2536_v37, %v2429_v54  ;;  %v2248_v5 = vmul.f32 %v2996_v58, %v3990_v61  ;;  %2103 = vst [vmem:[%s4031_s23 + $0xd0] sm:$0xff] %v3028_v12  ;;  %v2250_v36 = vmul.f32 %v3028_v12, %v3990_v61  ;;  %v2998_v14 = vadd.f32 %v1806_v42, %v3938_v48  ;;  %v1814_v47 = vpop.f32.mrb[49].mxu0  ;;  %v2040_v25 = vpop.f32.mrb[49].mxu1 }
 0x25b   : > { %v3030_v28 = vadd.f32 %v2032_v46, %v3942_v52  ;;  %2102 = vst [vmem:[%s4031_s23 + $0xc8] sm:$0xff] %v2997_v40  ;;  %v2249_v15 = vmul.f32 %v2997_v40, %v3990_v61  ;;  %2104 = vst [vmem:[%s4031_s23 + $0xd8] sm:$0xff] %v3029_v17  ;;  %v2251_v29 = vmul.f32 %v3029_v17, %v3990_v61  ;;  %v1816_v56 = vpop.f32.mrb[50].mxu0  ;;  %v2042_v34 = vpop.f32.mrb[50].mxu1 }
 0x25c   : > { %v2999_v19 = vadd.f32 %v1808_v59, %v3946_v26  ;;  %v3031_v20 = vadd.f32 %v2034_v43, %v3953_v18  ;;  %v2293_v31 = vadd.f32 %v2292_v51, %v2248_v5  ;;  %v2430_v23 = vmul.f32 %v2248_v5, %v2248_v5  ;;  %2105 = vst [vmem:[%s4031_s23 + $0xe0] sm:$0xff] %v2998_v14  ;;  %v1818_v37 = vpop.f32.mrb[51].mxu0  ;;  %v2044_v41 = vpop.f32.mrb[51].mxu1 }
 0x25d   : > { %v2335_v24 = vadd.f32 %v2334_v50, %v2250_v36  ;;  %v2432_v32 = vmul.f32 %v2250_v36, %v2250_v36  ;;  %2107 = vst [vmem:[%s4031_s23 + $0xf0] sm:$0xff] %v3030_v28  ;;  %v2314_v53 = vadd.f32 %v2313_v2, %v2249_v15  ;;  %v2431_v0 = vmul.f32 %v2249_v15, %v2249_v15 }
 0x25e   : > { %v2356_v16 = vadd.f32 %v2355_v9, %v2251_v29  ;;  %v2433_v61 = vmul.f32 %v2251_v29, %v2251_v29  ;;  %2106 = vst [vmem:[%s4031_s23 + $0xe8] sm:$0xff] %v2999_v19  ;;  %2108 = vst [vmem:[%s4031_s23 + $0xf8] sm:$0xff] %v3031_v20  ;;  %v2475_v30 = vadd.f32 %v2474_v10, %v2430_v23 }
 0x25f   : > { %v2517_v35 = vadd.f32 %v2516_v11, %v2432_v32  ;;  %v2252_v33 = vmul.f32 %v2998_v14, %v3993_v62  ;;  %v2254_v38 = vmul.f32 %v3030_v28, %v3993_v62  ;;  %v2496_v39 = vadd.f32 %v2495_v57, %v2431_v0 }
 0x260   : > { %v2538_v42 = vadd.f32 %v2537_v60, %v2433_v61  ;;  %v2253_v46 = vmul.f32 %v2999_v19, %v3993_v62  ;;  %v2255_v51 = vmul.f32 %v3031_v20, %v3993_v62  ;;  %v3000_v11 = vadd.f32 %v1812_v44, %v3938_v48 }
 0x261   : > { %v2294_v49 = vadd.f32 %v2293_v31, %v2252_v33  ;;  %v2434_v50 = vmul.f32 %v2252_v33, %v2252_v33  ;;  %v2336_v55 = vadd.f32 %v2335_v24, %v2254_v38  ;;  %v2436_v59 = vmul.f32 %v2254_v38, %v2254_v38  ;;  %v1822_v40 = vpop.f32.mrb[52].mxu0  ;;  %v2048_v17 = vpop.f32.mrb[52].mxu1 }
 0x262   : > { %v2315_v43 = vadd.f32 %v2314_v53, %v2253_v46  ;;  %v2435_v2 = vmul.f32 %v2253_v46, %v2253_v46  ;;  %v2357_v3 = vadd.f32 %v2356_v16, %v2255_v51  ;;  %v2437_v9 = vmul.f32 %v2255_v51, %v2255_v51  ;;  %2109 = vst [vmem:[%s4031_s23 + $0x100] sm:$0xff] %v3000_v11  ;;  %v1824_v15 = vpop.f32.mrb[53].mxu0  ;;  %v2050_v29 = vpop.f32.mrb[53].mxu1 }
 0x263   : > { %v2476_v54 = vadd.f32 %v2475_v30, %v2434_v50  ;;  %v2518_v10 = vadd.f32 %v2517_v35, %v2436_v59  ;;  %v3032_v58 = vadd.f32 %v2038_v22, %v3942_v52  ;;  %v3001_v57 = vadd.f32 %v1814_v47, %v3946_v26  ;;  %v1826_v31 = vpop.f32.mrb[54].mxu0  ;;  %v2052_v23 = vpop.f32.mrb[54].mxu1 }
 0x264   : > { %v2497_v12 = vadd.f32 %v2496_v39, %v2435_v2  ;;  %v2539_v62 = vadd.f32 %v2538_v42, %v2437_v9  ;;  %v3033_v60 = vadd.f32 %v2040_v25, %v3953_v18  ;;  %v2256_v5 = vmul.f32 %v3000_v11, %v3996_v63  ;;  %v1828_v53 = vpop.f32.mrb[55].mxu0  ;;  %v2054_v0 = vpop.f32.mrb[55].mxu1 }
 0x265   : > { %2111 = vst [vmem:[%s4031_s23 + $0x110] sm:$0xff] %v3032_v58  ;;  %v2258_v36 = vmul.f32 %v3032_v58, %v3996_v63  ;;  %v3002_v14 = vadd.f32 %v1816_v56, %v3938_v48  ;;  %v3034_v28 = vadd.f32 %v2042_v34, %v3942_v52  ;;  %2110 = vst [vmem:[%s4031_s23 + $0x108] sm:$0xff] %v3001_v57 }
 0x266   : > { %v2257_v19 = vmul.f32 %v3001_v57, %v3996_v63  ;;  %2112 = vst [vmem:[%s4031_s23 + $0x118] sm:$0xff] %v3033_v60  ;;  %v2259_v20 = vmul.f32 %v3033_v60, %v3996_v63  ;;  %v3003_v44 = vadd.f32 %v1818_v37, %v3946_v26  ;;  %v3035_v22 = vadd.f32 %v2044_v41, %v3953_v18 }
 0x267   : > { %v2295_v24 = vadd.f32 %v2294_v49, %v2256_v5  ;;  %v2438_v32 = vmul.f32 %v2256_v5, %v2256_v5  ;;  %v2337_v47 = vadd.f32 %v2336_v55, %v2258_v36  ;;  %v2440_v25 = vmul.f32 %v2258_v36, %v2258_v36  ;;  %2113 = vst [vmem:[%s4031_s23 + $0x120] sm:$0xff] %v3002_v14 }
 0x268   : > { %2115 = vst [vmem:[%s4031_s23 + $0x130] sm:$0xff] %v3034_v28  ;;  %v2316_v16 = vadd.f32 %v2315_v43, %v2257_v19  ;;  %v2439_v61 = vmul.f32 %v2257_v19, %v2257_v19  ;;  %v2358_v56 = vadd.f32 %v2357_v3, %v2259_v20  ;;  %v2441_v63 = vmul.f32 %v2259_v20, %v2259_v20 }
 0x269   : > { %2114 = vst [vmem:[%s4031_s23 + $0x128] sm:$0xff] %v3003_v44  ;;  %2116 = vst [vmem:[%s4031_s23 + $0x138] sm:$0xff] %v3035_v22  ;;  %v2477_v34 = vadd.f32 %v2476_v54, %v2438_v32  ;;  %v2519_v30 = vadd.f32 %v2518_v10, %v2440_v25  ;;  %v2260_v35 = vmul.f32 %v3002_v14, %v3999_v4  ;;  %v4149_v2 = vpop.f32.mrb[56].mxu0  ;;  %v4151_v3 = vpop.f32.mrb[56].mxu1 }
 0x26a   : > { %v2262_v33 = vmul.f32 %v3034_v28, %v3999_v4  ;;  %v2498_v38 = vadd.f32 %v2497_v12, %v2439_v61  ;;  %v2540_v37 = vadd.f32 %v2539_v62, %v2441_v63  ;;  %v2261_v41 = vmul.f32 %v3003_v44, %v3999_v4  ;;  %v4155_v11 = vpop.f32.mrb[57].mxu0  ;;  %v4157_v58 = vpop.f32.mrb[57].mxu1 }
 0x26b   : > { %v2263_v39 = vmul.f32 %v3035_v22, %v3999_v4  ;;  %v2296_v42 = vadd.f32 %v2295_v24, %v2260_v35  ;;  %v2442_v46 = vmul.f32 %v2260_v35, %v2260_v35  ;;  %v3004_v10 = vadd.f32 %v1822_v40, %v3938_v48  ;;  %v4161_v5 = vpop.f32.mrb[58].mxu0  ;;  %v4163_v36 = vpop.f32.mrb[58].mxu1 }
 0x26c   : > { %v2338_v51 = vadd.f32 %v2337_v47, %v2262_v33  ;;  %v2444_v49 = vmul.f32 %v2262_v33, %v2262_v33  ;;  %v2317_v50 = vadd.f32 %v2316_v16, %v2261_v41  ;;  %v2443_v55 = vmul.f32 %v2261_v41, %v2261_v41  ;;  %v1838_v19 = vpop.f32.mrb[59].mxu0 }
 0x26d   : > { %v2359_v59 = vadd.f32 %v2358_v56, %v2263_v39  ;;  %v2445_v43 = vmul.f32 %v2263_v39, %v2263_v39  ;;  %v2478_v9 = vadd.f32 %v2477_v34, %v2442_v46  ;;  %v3036_v4 = vadd.f32 %v2048_v17, %v3942_v52  ;;  %2117 = vst [vmem:[%s4031_s23 + $0x140] sm:$0xff] %v3004_v10 }
 0x26e   : > { %v2520_v54 = vadd.f32 %v2519_v30, %v2444_v49  ;;  %v2499_v12 = vadd.f32 %v2498_v38, %v2443_v55  ;;  %v3005_v57 = vadd.f32 %v1824_v15, %v3946_v26  ;;  %v3037_v60 = vadd.f32 %v2050_v29, %v3953_v18  ;;  %v2064_v15 = vpop.f32.mrb[59].mxu1 }
 0x26f   : > { %v2541_v62 = vadd.f32 %v2540_v37, %v2445_v43  ;;  %v2264_v40 = vmul.f32 %v3004_v10, %v4002_v6  ;;  %2119 = vst [vmem:[%s4031_s23 + $0x150] sm:$0xff] %v3036_v4  ;;  %v2266_v17 = vmul.f32 %v3036_v4, %v4002_v6  ;;  %v3006_v14 = vadd.f32 %v1826_v31, %v3938_v48 }
 0x270   : > { %v3038_v28 = vadd.f32 %v2052_v23, %v3942_v52  ;;  %2118 = vst [vmem:[%s4031_s23 + $0x148] sm:$0xff] %v3005_v57  ;;  %v2265_v29 = vmul.f32 %v3005_v57, %v4002_v6  ;;  %2120 = vst [vmem:[%s4031_s23 + $0x158] sm:$0xff] %v3037_v60  ;;  %v2267_v20 = vmul.f32 %v3037_v60, %v4002_v6 }
 0x271   : > { %v3007_v44 = vadd.f32 %v1828_v53, %v3946_v26  ;;  %v3039_v22 = vadd.f32 %v2054_v0, %v3953_v18  ;;  %v2297_v24 = vadd.f32 %v2296_v42, %v2264_v40  ;;  %v2446_v32 = vmul.f32 %v2264_v40, %v2264_v40  ;;  %2121 = vst [vmem:[%s4031_s23 + $0x160] sm:$0xff] %v3006_v14  ;;  %v4185_v33 = vpop.f32.mrb[60].mxu0  ;;  %v4187_v38 = vpop.f32.mrb[60].mxu1 }
 0x272   : > { %v2339_v47 = vadd.f32 %v2338_v51, %v2266_v17  ;;  %v2448_v31 = vmul.f32 %v2266_v17, %v2266_v17  ;;  %2123 = vst [vmem:[%s4031_s23 + $0x170] sm:$0xff] %v3038_v28  ;;  %v2318_v23 = vadd.f32 %v2317_v50, %v2265_v29  ;;  %v2447_v25 = vmul.f32 %v2265_v29, %v2265_v29  ;;  %v4189_v46 = vpop.f32.mrb[61].mxu0  ;;  %v4191_v51 = vpop.f32.mrb[61].mxu1 }
 0x273   : > { %v2360_v16 = vadd.f32 %v2359_v59, %v2267_v20  ;;  %v2449_v61 = vmul.f32 %v2267_v20, %v2267_v20  ;;  %2122 = vst [vmem:[%s4031_s23 + $0x168] sm:$0xff] %v3007_v44  ;;  %2124 = vst [vmem:[%s4031_s23 + $0x178] sm:$0xff] %v3039_v22  ;;  %v2479_v56 = vadd.f32 %v2478_v9, %v2446_v32  ;;  %v4193_v43 = vpop.f32.mrb[62].mxu0 }
 0x274   : > { %v2521_v63 = vadd.f32 %v2520_v54, %v2448_v31  ;;  %v2268_v6 = vmul.f32 %v3006_v14, %v4005_v7  ;;  %v2270_v53 = vmul.f32 %v3038_v28, %v4005_v7  ;;  %v2500_v34 = vadd.f32 %v2499_v12, %v2447_v25  ;;  %v4201_v12 = vpop.f32.mrb[63].mxu0 }
 0x275   : > { %v2542_v0 = vadd.f32 %v2541_v62, %v2449_v61  ;;  %v2269_v30 = vmul.f32 %v3007_v44, %v4005_v7  ;;  %v2271_v35 = vmul.f32 %v3039_v22, %v4005_v7  ;;  %v4195_v7 = vpop.f32.mrb[62].mxu1  ;;  %v3008_v10 = vadd.f32 %v4149_v2, %v3938_v48 }
 0x276   : > { %v2298_v37 = vadd.f32 %v2297_v24, %v2268_v6  ;;  %v2450_v41 = vmul.f32 %v2268_v6, %v2268_v6  ;;  %v2340_v39 = vadd.f32 %v2339_v47, %v2270_v53  ;;  %v2452_v42 = vmul.f32 %v2270_v53, %v2270_v53  ;;  %v4203_v62 = vpop.f32.mrb[63].mxu1 }
 0x277   : > { %v2319_v49 = vadd.f32 %v2318_v23, %v2269_v30  ;;  %v2451_v50 = vmul.f32 %v2269_v30, %v2269_v30  ;;  %v2361_v55 = vadd.f32 %v2360_v16, %v2271_v35  ;;  %v2453_v59 = vmul.f32 %v2271_v35, %v2271_v35  ;;  %2125 = vst [vmem:[%s4031_s23 + $0x180] sm:$0xff] %v3008_v10 }
 0x278   : > { %v2480_v9 = vadd.f32 %v2479_v56, %v2450_v41  ;;  %v2522_v54 = vadd.f32 %v2521_v63, %v2452_v42  ;;  %v3040_v4 = vadd.f32 %v4151_v3, %v3942_v52  ;;  %v3009_v40 = vadd.f32 %v4155_v11, %v3946_v26 }
 0x279   : > { %v2501_v57 = vadd.f32 %v2500_v34, %v2451_v50  ;;  %v2543_v60 = vadd.f32 %v2542_v0, %v2453_v59  ;;  %v3041_v17 = vadd.f32 %v4157_v58, %v3953_v18  ;;  %v2272_v2 = vmul.f32 %v3008_v10, %v4008_v8 }
 0x27a   : > { %2127 = vst [vmem:[%s4031_s23 + $0x190] sm:$0xff] %v3040_v4  ;;  %v2274_v3 = vmul.f32 %v3040_v4, %v4008_v8  ;;  %v3010_v14 = vadd.f32 %v4161_v5, %v3938_v48  ;;  %v3042_v28 = vadd.f32 %v4163_v36, %v3942_v52  ;;  %2126 = vst [vmem:[%s4031_s23 + $0x188] sm:$0xff] %v3009_v40 }
 0x27b   : > { %v2273_v11 = vmul.f32 %v3009_v40, %v4008_v8  ;;  %2128 = vst [vmem:[%s4031_s23 + $0x198] sm:$0xff] %v3041_v17  ;;  %v2275_v58 = vmul.f32 %v3041_v17, %v4008_v8  ;;  %v3011_v29 = vadd.f32 %v1838_v19, %v3946_v26  ;;  %v3043_v20 = vadd.f32 %v2064_v15, %v3953_v18 }
 0x27c   : > { %v2299_v44 = vadd.f32 %v2298_v37, %v2272_v2  ;;  %v2454_v22 = vmul.f32 %v2272_v2, %v2272_v2  ;;  %v2341_v24 = vadd.f32 %v2340_v39, %v2274_v3  ;;  %v2456_v32 = vmul.f32 %v2274_v3, %v2274_v3  ;;  %2129 = vst [vmem:[%s4031_s23 + $0x1a0] sm:$0xff] %v3010_v14 }
 0x27d   : > { %2131 = vst [vmem:[%s4031_s23 + $0x1b0] sm:$0xff] %v3042_v28  ;;  %v2320_v5 = vadd.f32 %v2319_v49, %v2273_v11  ;;  %v2455_v36 = vmul.f32 %v2273_v11, %v2273_v11  ;;  %v2362_v47 = vadd.f32 %v2361_v55, %v2275_v58  ;;  %v2457_v31 = vmul.f32 %v2275_v58, %v2275_v58 }
 0x27e   : > { %2130 = vst [vmem:[%s4031_s23 + $0x1a8] sm:$0xff] %v3011_v29  ;;  %2132 = vst [vmem:[%s4031_s23 + $0x1b8] sm:$0xff] %v3043_v20  ;;  %v2481_v23 = vadd.f32 %v2480_v9, %v2454_v22  ;;  %v2523_v25 = vadd.f32 %v2522_v54, %v2456_v32  ;;  %v2276_v8 = vmul.f32 %v3010_v14, %v4014_v13 }
 0x27f   : > { %v2278_v19 = vmul.f32 %v3042_v28, %v4014_v13  ;;  %v2502_v15 = vadd.f32 %v2501_v57, %v2455_v36  ;;  %v2544_v16 = vadd.f32 %v2543_v60, %v2457_v31  ;;  %v2277_v61 = vmul.f32 %v3011_v29, %v4014_v13 }
 0x280   : > { %v2279_v56 = vmul.f32 %v3043_v20, %v4014_v13  ;;  %v2300_v63 = vadd.f32 %v2299_v44, %v2276_v8  ;;  %v2458_v6 = vmul.f32 %v2276_v8, %v2276_v8  ;;  %v3012_v42 = vadd.f32 %v4185_v33, %v3938_v48 }
 0x281   : > { %v2342_v53 = vadd.f32 %v2341_v24, %v2278_v19  ;;  %v2460_v34 = vmul.f32 %v2278_v19, %v2278_v19  ;;  %v2321_v0 = vadd.f32 %v2320_v5, %v2277_v61  ;;  %v2459_v30 = vmul.f32 %v2277_v61, %v2277_v61 }
 0x282   : > { %v2363_v35 = vadd.f32 %v2362_v47, %v2279_v56  ;;  %v2461_v37 = vmul.f32 %v2279_v56, %v2279_v56  ;;  %v2482_v41 = vadd.f32 %v2481_v23, %v2458_v6  ;;  %v3044_v13 = vadd.f32 %v4187_v38, %v3942_v52  ;;  %2133 = vst [vmem:[%s4031_s23 + $0x1c0] sm:$0xff] %v3012_v42 }
 0x283   : > { %v2524_v39 = vadd.f32 %v2523_v25, %v2460_v34  ;;  %v4237_v49 = vadd.f32 %v2502_v15, %v2459_v30  ;;  %v3013_v55 = vadd.f32 %v4189_v46, %v3946_v26  ;;  %v3045_v59 = vadd.f32 %v4191_v51, %v3953_v18 }
 0x284   : > { %v4239_v50 = vadd.f32 %v2544_v16, %v2461_v37  ;;  %v2280_v9 = vmul.f32 %v3012_v42, %v4018_v45  ;;  %2135 = vst [vmem:[%s4031_s23 + $0x1d0] sm:$0xff] %v3044_v13  ;;  %v2282_v33 = vmul.f32 %v3044_v13, %v4018_v45  ;;  %v3014_v38 = vadd.f32 %v4193_v43, %v3938_v48 }
 0x285   : > { %v3046_v54 = vadd.f32 %v4195_v7, %v3942_v52  ;;  %2134 = vst [vmem:[%s4031_s23 + $0x1c8] sm:$0xff] %v3013_v55  ;;  %v2281_v46 = vmul.f32 %v3013_v55, %v4018_v45  ;;  %2136 = vst [vmem:[%s4031_s23 + $0x1d8] sm:$0xff] %v3045_v59  ;;  %v2283_v51 = vmul.f32 %v3045_v59, %v4018_v45 }
 0x286   : > { %v3015_v48 = vadd.f32 %v4201_v12, %v3946_v26  ;;  %v3047_v52 = vadd.f32 %v4203_v62, %v3953_v18  ;;  %v2301_v43 = vadd.f32 %v2300_v63, %v2280_v9  ;;  %v2462_v7 = vmul.f32 %v2280_v9, %v2280_v9  ;;  %2137 = vst [vmem:[%s4031_s23 + $0x1e0] sm:$0xff] %v3014_v38 }
 0x287   : > { %v2343_v10 = vadd.f32 %v2342_v53, %v2282_v33  ;;  %v2464_v4 = vmul.f32 %v2282_v33, %v2282_v33  ;;  %2139 = vst [vmem:[%s4031_s23 + $0x1f0] sm:$0xff] %v3046_v54  ;;  %v2322_v57 = vadd.f32 %v2321_v0, %v2281_v46  ;;  %v2463_v60 = vmul.f32 %v2281_v46, %v2281_v46 }
 0x288   : > { %v2364_v40 = vadd.f32 %v2363_v35, %v2283_v51  ;;  %v2465_v45 = vmul.f32 %v2283_v51, %v2283_v51  ;;  %2138 = vst [vmem:[%s4031_s23 + $0x1e8] sm:$0xff] %v3015_v48  ;;  %2140 = vst [vmem:[%s4031_s23 + $0x1f8] sm:$0xff] %v3047_v52  ;;  %v2483_v26 = vadd.f32 %v2482_v41, %v2462_v7 }
 0x289   : > { %v2525_v12 = vadd.f32 %v2524_v39, %v2464_v4  ;;  %v2284_v18 = vmul.f32 %v3014_v38, %v4024_v21  ;;  %v2286_v62 = vmul.f32 %v3046_v54, %v4024_v21 }
 0x28a   : > { %3444 = shalt.err (!%p3441_p7)
}
 0x28b   : > { %s3445_s22 = scalar_lea.hbm %s4256_s17, 8192  ;;  %s3449_s21 = scalar_lea.hbm %s4408_s5, 16384 }
 0x28c   : > { %p3446_p8 = scmp.ne.s32.totalorder %s4256_s17, %s3445_s22  ;;  %p3450_p1 = scmp.lt.u32.totalorder %s4256_s17, %s4408_s5 }
 0x28d   : > { %p3451_p0 = scmp.lt.u32.totalorder %s3449_s21, %s3445_s22  ;;  %p3453_p6 = scmp.lt.u32.totalorder %s3445_s22, %s4256_s17 }
 0x28e   : > { %p3447_p11 = pnand %p3446_p8, %p4421_p9 }
 0x28f   : > { %p3452_p5 = por %p3451_p0, %p3450_p1 }
 0x290   : > { %p3448_p13 = pneg %p3447_p11 }
 0x291   : > { %p3454_p10 = por %p3453_p6, %p3452_p5 }
 0x293   : > { %p3455_p12 = pnand %p3454_p10, %p3448_p13 }
 0x295   : > { %3458 = shalt.err (!%p3455_p12)
}
 0x296   : > { %s3566_s18 = smov 512   ;;  %s3567_s19 = smov 32   ;;  %v2504_v17 = vadd.f32 %v4237_v49, %v2463_v60  ;;  %v2546_v2 = vadd.f32 %v4239_v50, %v2465_v45  ;;  %v2285_v3 = vmul.f32 %v3015_v48, %v4024_v21  ;;  %v2287_v14 = vmul.f32 %v3047_v52, %v4024_v21 }
 0x297   : > { %3116 = dma.vmem_to_hbm [thread:$0]  (%p4421_p9), %s4258_s9, 8192, %s4256_s17, %s2585_s15, %s3566_s18, %s3566_s18, %s3567_s19   ;;  %v2302_v28 = vadd.f32 %v2301_v43, %v2284_v18  ;;  %v2466_v11 = vmul.f32 %v2284_v18, %v2284_v18  ;;  %v2344_v58 = vadd.f32 %v2343_v10, %v2286_v62  ;;  %v2468_v29 = vmul.f32 %v2286_v62, %v2286_v62 }
 0x298   : > { %v2323_v20 = vadd.f32 %v2322_v57, %v2285_v3  ;;  %v2467_v44 = vmul.f32 %v2285_v3, %v2285_v3  ;;  %v2365_v22 = vadd.f32 %v2364_v40, %v2287_v14  ;;  %v2469_v24 = vmul.f32 %v2287_v14, %v2287_v14  ;;  %s2779_s9 = sshll.u32 %s3967_s20, 2  ;;  %s2589_s17 = sand.u32 1, %s3631_s28  }
 0x299   : > { %v2303_v32 = vrot.slane %v2302_v28, 4  ;;  %v2484_v5 = vadd.f32 %v2483_v26, %v2466_v11  ;;  %v2345_v36 = vrot.slane %v2344_v58, 4  ;;  %v2526_v47 = vadd.f32 %v2525_v12, %v2468_v29  ;;  %s2982_s15 = sshll.u32 %s3631_s28, 6  ;;  %s298_s20 = scalar_lea.vmem [#allocation6], %s2779_s9 }
 0x29a   : > { %v2324_v31 = vrot.slane %v2323_v20, 4  ;;  %v2505_v23 = vadd.f32 %v2504_v17, %v2467_v44  ;;  %v2366_v25 = vrot.slane %v2365_v22, 4  ;;  %v2547_v8 = vadd.f32 %v2546_v2, %v2469_v24  ;;  %s2626_s13 = sshll.u32 %s298_s20, 4  ;;  %s4314_s22 = scalar_lea.vmem [#allocation8], %s2779_s9  ;;  %s4323_s13 = int_to_ptr.vmem [resolvable:$true] %s2626_s13 }
 0x29b   : > { %v2304_v19 = vadd.f32 %v2303_v32, %v2302_v28  ;;  %v2485_v15 = vrot.slane %v2484_v5, 4  ;;  %v2346_v16 = vadd.f32 %v2345_v36, %v2344_v58  ;;  %v2527_v21 = vrot.slane %v2526_v47, 4  ;;  %s2640_s23 = sshll.u32 %s4314_s22, 4  ;;  %s4321_s21 = scalar_lea.hbm %s4409_s6, %s2982_s15  ;;  %s4333_s23 = int_to_ptr.vmem [resolvable:$true] %s2640_s23 }
 0x29c   : > { %v2325_v61 = vadd.f32 %v2324_v31, %v2323_v20  ;;  %v2506_v56 = vrot.slane %v2505_v23, 4  ;;  %v2367_v63 = vadd.f32 %v2366_v25, %v2365_v22  ;;  %v2548_v6 = vrot.slane %v2547_v8, 4  ;;  %s4330_s18 = scalar_lea.hbm %s4410_s7, %s2982_s15  ;;  %s4335_s19 = scalar_lea.sflag [#allocation7], %s2589_s17 }
 0x29d   : > { %v2305_v53 = vrot.slane %v2304_v19, 2  ;;  %v2486_v34 = vadd.f32 %v2485_v15, %v2484_v5  ;;  %v2347_v0 = vrot.slane %v2346_v16, 2  ;;  %v2528_v30 = vadd.f32 %v2527_v21, %v2526_v47  ;;  %s3459_s9 = scalar_lea.vmem %s4323_s13, 64  ;;  %s3568_s28 = smov [#allocation6]  }
 0x29e   : > { %v2326_v35 = vrot.slane %v2325_v61, 2  ;;  %v2507_v37 = vadd.f32 %v2506_v56, %v2505_v23  ;;  %v2368_v41 = vrot.slane %v2367_v63, 2  ;;  %v2549_v39 = vadd.f32 %v2548_v6, %v2547_v8  ;;  %p3460_p2 = scmp.ne.s32.totalorder %s4323_s13, %s3459_s9  ;;  %s3463_s8 = sshll.u32 %s3568_s28, 4  ;;  %s3464_s8 = int_to_ptr.vmem [resolvable:$false] %s3463_s8 }
 0x29f   : > { %v2306_v42 = vadd.f32 %v2305_v53, %v2304_v19  ;;  %v2487_v13 = vrot.slane %v2486_v34, 2  ;;  %v2348_v49 = vadd.f32 %v2347_v0, %v2346_v16  ;;  %v2529_v50 = vrot.slane %v2528_v30, 2  ;;  %p3466_p7 = scmp.lt.s32.totalorder %s4323_s13, %s3464_s8 }
 0x2a0   : > { %v2327_v55 = vadd.f32 %v2326_v35, %v2325_v61  ;;  %v2508_v59 = vrot.slane %v2507_v37, 2  ;;  %v2369_v9 = vadd.f32 %v2368_v41, %v2367_v63  ;;  %v2550_v33 = vrot.slane %v2549_v39, 2  ;;  %p3461_p3 = pnand %p3460_p2, %p4421_p9 }
 0x2a1   : > { %v2307_v38 = vrot.slane %v2306_v42, 1  ;;  %v2488_v54 = vadd.f32 %v2487_v13, %v2486_v34  ;;  %v2349_v46 = vrot.slane %v2348_v49, 1  ;;  %v2530_v51 = vadd.f32 %v2529_v50, %v2528_v30 }
 0x2a2   : > { %v2328_v48 = vrot.slane %v2327_v55, 1  ;;  %v2509_v52 = vadd.f32 %v2508_v59, %v2507_v37  ;;  %v2370_v43 = vrot.slane %v2369_v9, 1  ;;  %v2551_v7 = vadd.f32 %v2550_v33, %v2549_v39  ;;  %p3462_p4 = pneg %p3461_p3 }
 0x2a3   : > { %v2308_v10 = vadd.f32 %v2307_v38, %v2306_v42  ;;  %v2489_v4 = vrot.slane %v2488_v54, 1  ;;  %v2350_v57 = vadd.f32 %v2349_v46, %v2348_v49  ;;  %v2531_v60 = vrot.slane %v2530_v51, 1 }
 0x2a4   : > { %v2329_v40 = vadd.f32 %v2328_v48, %v2327_v55  ;;  %v2510_v45 = vrot.slane %v2509_v52, 1  ;;  %v2371_v26 = vadd.f32 %v2370_v43, %v2369_v9  ;;  %v2552_v12 = vrot.slane %v2551_v7, 1 }
 0x2a5   : > { %v2490_v18 = vadd.f32 %v2489_v4, %v2488_v54  ;;  %v2532_v62 = vadd.f32 %v2531_v60, %v2530_v51  ;;  %vm4310_vm1 = vcmp.lt.s32.totalorder %v348_v27, 512 }
 0x2a6   : > { %v2376_v17 = vcombine.low %v2308_v10, %v2329_v40  ;;  %v2511_v2 = vadd.f32 %v2510_v45, %v2509_v52  ;;  %v2377_v3 = vcombine.low %v2350_v57, %v2371_v26  ;;  %v2553_v14 = vadd.f32 %v2552_v12, %v2551_v7 }
 0x2a8   : > { %v2384_v28 = vrot.slane %v2376_v17, %v4027_v1  ;;  %v2558_v11 = vcombine.low %v2490_v18, %v2511_v2  ;;  %v2391_v58 = vrot.slane %v2377_v3, %v4027_v1  ;;  %v2559_v29 = vcombine.low %v2532_v62, %v2553_v14 }
 0x2aa   : > { %v2566_v20 = vrot.slane %v2558_v11, %v4027_v1  ;;  %v2573_v44 = vrot.slane %v2559_v29, %v4027_v1  ;;  %v2392_v22 = vcombine.low %v2384_v28, %v2391_v58 }
 0x2ac   : > { %v2399_v32 = vrot.slane %v2392_v22, %v4027_v1  ;;  %v2574_v27 = vcombine.low %v2566_v20, %v2573_v44 }
 0x2ae   : > { %2405 = vst.msk [vmem:[%s298_s20] sm:$0xf] %vm4310_vm1, %v2399_v32  ;;  %v2581_v5 = vrot.slane %v2574_v27, %v4027_v1  ;;  %s3465_s20 = scalar_lea.vmem %s3464_s8, 128 }
 0x2af   : > { %p3467_p8 = scmp.lt.s32.totalorder %s3465_s20, %s3459_s9 }
 0x2b1   : > { %p3468_p11 = por %p3467_p8, %p3466_p7 }
 0x2b3   : > { %p3469_p13 = pnand %p3468_p11, %p3462_p4 }
 0x2b5   : > { %3472 = shalt.err (!%p3469_p13)
}
 0x2b6   : > { %s3473_s17 = scalar_lea.hbm %s4321_s21, 64  ;;  %s3477_s16 = scalar_lea.hbm %s4409_s6, 128 }
 0x2b7   : > { %p3474_p1 = scmp.ne.s32.totalorder %s4321_s21, %s3473_s17  ;;  %p3478_p6 = scmp.lt.u32.totalorder %s4321_s21, %s4409_s6 }
 0x2b8   : > { %p3479_p10 = scmp.lt.u32.totalorder %s3477_s16, %s3473_s17  ;;  %p3481_p2 = scmp.lt.u32.totalorder %s3473_s17, %s4321_s21 }
 0x2b9   : > { %p3475_p0 = pnand %p3474_p1, %p4421_p9 }
 0x2ba   : > { %p3480_p12 = por %p3479_p10, %p3478_p6 }
 0x2bb   : > { %p3476_p5 = pneg %p3475_p0 }
 0x2bc   : > { %p3482_p3 = por %p3481_p2, %p3480_p12 }
 0x2be   : > { %p3483_p4 = pnand %p3482_p3, %p3476_p5 }
 0x2c0   : > { %3486 = shalt.err (!%p3483_p4)
}
 0x2c1   : > { %3117 = dma.vmem_to_hbm [thread:$0]  (%p4421_p9), %s4323_s13, 64, %s4321_s21, %s4335_s19   ;;  %2583 = vst.msk [vmem:[%s4314_s22] sm:$0xf] %vm4310_vm1, %v2581_v5 }
 0x2c2   : > { %s3487_s9 = scalar_lea.vmem %s4333_s23, 64  ;;  %s3569_s20 = smov [#allocation8]  }
 0x2c3   : > { %p3488_p7 = scmp.ne.s32.totalorder %s4333_s23, %s3487_s9  ;;  %s3491_s17 = sshll.u32 %s3569_s20, 4  ;;  %s3492_s17 = int_to_ptr.vmem [resolvable:$false] %s3491_s17 }
 0x2c4   : > { %s3493_s15 = scalar_lea.vmem %s3492_s17, 128  ;;  %p3494_p13 = scmp.lt.s32.totalorder %s4333_s23, %s3492_s17 }
 0x2c5   : > { %p3489_p8 = pnand %p3488_p7, %p4421_p9  ;;  %p3495_p1 = scmp.lt.s32.totalorder %s3493_s15, %s3487_s9 }
 0x2c7   : > { %p3490_p11 = pneg %p3489_p8  ;;  %p3496_p0 = por %p3495_p1, %p3494_p13 }
 0x2c9   : > { %p3497_p5 = pnand %p3496_p0, %p3490_p11 }
 0x2cb   : > { %3500 = shalt.err (!%p3497_p5)
}
 0x2cc   : > { %s3501_s13 = scalar_lea.hbm %s4330_s18, 64  ;;  %s3505_s14 = scalar_lea.hbm %s4410_s7, 128 }
 0x2cd   : > { %p3502_p6 = scmp.ne.s32.totalorder %s4330_s18, %s3501_s13  ;;  %p3506_p2 = scmp.lt.u32.totalorder %s4330_s18, %s4410_s7 }
 0x2ce   : > { %p3507_p3 = scmp.lt.u32.totalorder %s3505_s14, %s3501_s13  ;;  %p3509_p7 = scmp.lt.u32.totalorder %s3501_s13, %s4330_s18 }
 0x2cf   : > { %p3503_p10 = pnand %p3502_p6, %p4421_p9 }
 0x2d0   : > { %p3508_p4 = por %p3507_p3, %p3506_p2 }
 0x2d1   : > { %p3504_p12 = pneg %p3503_p10 }
 0x2d2   : > { %p3510_p8 = por %p3509_p7, %p3508_p4 }
 0x2d4   : > { %p3511_p11 = pnand %p3510_p8, %p3504_p12 }
 0x2d6   : > { %3514 = shalt.err (!%p3511_p11)
}
 0x2d7   : > { %3118 = dma.vmem_to_hbm [thread:$0]  (%p4421_p9), %s4333_s23, 64, %s4330_s18, %s4335_s19  }
 0x2d8 PF: > { %p3138_p13 = scmp.ge.s32.totalorder %s3557_s27, 2  ;;  %s2652_s8 = sand.u32 1, %s3545_s24  }
 0x2d9   : > { %p4424_p1 = scmp.ne.s32.totalorder %s4415_s12, 0  ;;  %s2653_s9 = scalar_lea.sflag [#allocation4], %s2652_s8 }
 0x2db   : > { %p3127_p0 = pnand %p3138_p13, %p4424_p1 }
 0x2dd   : > { %3536 = dma.done.wait (!%p3127_p0), %s2653_s9, 8192  }
 0x2de   : > { %3538 = vsyncadd (!%p3127_p0), %s2653_s9, 4294959104  ;;  %s2661_s20 = sand.u32 1, %s2772_s29  }
 0x2df   : > { %s2662_s17 = scalar_lea.sflag [#allocation7], %s2661_s20 }
 0x2e0   : > { %3540 = dma.done.wait (!%p3127_p0), %s2662_s17, 128  }
 0x2e1   : > { %3542 = vsyncadd (!%p3127_p0), %s2662_s17, 4294967168  ;;  %p22_p9 = scmp.ge.s32.totalorder %s3635_s30, 4   ;;  %s4425_s24 = smov %s3549_s25 }
 0x2e2   : > { %s4426_s25 = smov %s3553_s26  ;;  %s4427_s26 = smov %s3648_s10 }
 0x2e3   : > { %s4428_s27 = smov %s3635_s30  ;;  %24 = sbr.rel (!%p22_p9) target bundleno = 6 (0x6), region = 112 }
 0x2ea   :  { %2676 = vsyncpa [#allocation3], 1 }
 0x2eb   :  { %2678 = vsyncpa [#allocation3 + $0x1], 1 }
 0x2ec   :  { %2679 = vsyncpa [#allocation4], 1 }
 0x2ed   :  { %2681 = vsyncpa [#allocation4 + $0x1], 1 }
 0x2ee   :  { %2682 = vsyncpa [#allocation7], 1 }
 0x2ef   :  { %2684 = vsyncpa [#allocation7 + $0x1], 1 }

</bundles_post_ra>
